<compile_context>
chip_gen: v7x
topology: tpu7x:2x2x1
jax: 0.10.0
libtpu: 0.0.40
codegen_flags: <defaults>
</compile_context>

<pallas_src>
import functools

import jax
import jax.numpy as jnp
import numpy as np
from jax.experimental import pallas as pl
from jax.experimental.pallas import tpu as pltpu


def _round_up(x, m):
    return ((x + m - 1) // m) * m


def gru_chunk_kernel(gi_ref, whh_ref, bhn_ref, out_ref, h_ref, *, tc, hp):
    """One grid step = (one batch block) x (tc timesteps) of the GRU recurrence.

    gi_ref : (Bb, tc*3Hp)  precomputed x @ W_ih^T + b_ih (+ b_hr, b_hz), batch-major;
                           timestep t occupies lanes [t*3Hp, (t+1)*3Hp)
    whh_ref: (Hp, 3Hp)     recurrent weight (transposed), resident, single-buffered
    bhn_ref: (1, Hp)       b_hn (not foldable: applied inside r * (.))
    out_ref: (Bb, tc*Hp)   hidden states; timestep t at lanes [t*Hp, (t+1)*Hp)
    h_ref  : (Bb, Hp) f32  hidden state carried across time chunks (VMEM scratch)
    """
    c = pl.program_id(1)  # time-chunk index (sequential axis)

    @pl.when(c == 0)
    def _():
        h_ref[...] = jnp.zeros_like(h_ref)

    gp = 3 * hp
    bb = h_ref.shape[0]
    whh = whh_ref[...]                                   # resident (Hp, 3Hp)
    bhn = jnp.broadcast_to(bhn_ref[...], (bb, hp))       # broadcast hoisted out of loop
    h = h_ref[...]

    # Static Python loop: tc is small (<= 16) so the unroll / per-step live set stays
    # bounded; all lane slices below are 128-aligned whole-vreg selects.
    for t in range(tc):
        gi_t = gi_ref[:, t * gp:(t + 1) * gp].astype(jnp.float32)   # (Bb, 3Hp)
        gh = jnp.dot(h.astype(whh.dtype), whh,
                     preferred_element_type=jnp.float32)            # (Bb, 3Hp)
        # PyTorch GRU gate ordering: r, z, n
        r = jax.nn.sigmoid(gi_t[:, :hp] + gh[:, :hp])
        z = jax.nn.sigmoid(gi_t[:, hp:2 * hp] + gh[:, hp:2 * hp])
        n = jnp.tanh(gi_t[:, 2 * hp:] + r * (gh[:, 2 * hp:] + bhn))
        h = n + z * (h - n)                    # == (1-z)*n + z*h, one fewer vmul
        out_ref[:, t * hp:(t + 1) * hp] = h.astype(out_ref.dtype)   # lane-dense store

    h_ref[...] = h


def rnn_encoder_forward(x, w_ih, w_hh, b_ih, b_hh, *, time_chunk=16, precision="f32"):
    """Single-layer unidirectional GRU forward, batch_first (PyTorch nn.GRU layout:
       w_ih (3H, D_in), w_hh (3H, H), b_ih (3H,), b_hh (3H,)).
       Returns (outputs (B, T, H), hidden (1, B, H))."""
    assert precision in ("f32", "bf16")
    B, T, D_in = x.shape
    H = w_hh.shape[1]
    Hp = _round_up(H, 128)                      # lane-dense gates / outputs
    Gp = 3 * Hp
    f32 = jnp.float32
    gate_dtype = jnp.bfloat16 if precision == "bf16" else f32

    x = x.astype(f32)

    # ---- Pad weights / biases per-gate so gi/gh are lane-dense.  Padded lanes are
    #      exactly zero and stay zero through the recurrence (cropped at the end).
    wih_t = jnp.transpose(w_ih).astype(f32).reshape(D_in, 3, H)
    wih_t = jnp.pad(wih_t, ((0, 0), (0, 0), (0, Hp - H))).reshape(D_in, Gp)
    whh_t = jnp.transpose(w_hh).astype(f32).reshape(H, 3, H)
    whh_t = jnp.pad(whh_t, ((0, Hp - H), (0, 0), (0, Hp - H))).reshape(Hp, Gp)
    whh_t = whh_t.astype(gate_dtype)

    b_ih = b_ih.astype(f32)
    b_hh = b_hh.astype(f32)
    # b_hr, b_hz are foldable into the hoisted projection; b_hn is NOT (it sits inside
    # r * (W_hn h + b_hn) in the PyTorch GRU definition).
    b_fold = b_ih + jnp.concatenate([b_hh[:2 * H], jnp.zeros((H,), f32)])
    b_fold = jnp.pad(b_fold.reshape(3, H), ((0, 0), (0, Hp - H))).reshape(1, Gp)
    b_hn = jnp.pad(b_hh[2 * H:].reshape(1, H), ((0, 0), (0, Hp - H)))        # (1, Hp)

    # ---- Hoisted input projection: one big parallel matmul over all B*T rows,
    #      batch-major, no transposes anywhere.
    gi = (jnp.dot(x.reshape(B * T, D_in), wih_t, preferred_element_type=f32)
          + b_fold)                                                           # (B*T, Gp)
    gi = gi.astype(gate_dtype).reshape(B, T, Gp)

    # ---- Tile sizes.
    Tc = max(1, min(time_chunk, T))
    sub_align = 16 if precision == "bf16" else 8
    if B >= 16:
        # Split the batch so both v7x TensorCores get work; keep the sublane block
        # dim aligned and padding small.
        Bb = min(256, _round_up(pl.cdiv(B, 2), sub_align))
    else:
        Bb = B

    # ---- VMEM budget (per-TC): shrink blocks until they fit ~75% of it.
    try:
        vmem_phys = int(pltpu.get_tpu_info().vmem_capacity_bytes)
    except Exception:
        vmem_phys = 64 * 1024 * 1024            # conservative fallback: v7x per-TC VMEM
    budget = (vmem_phys * 3) // 4

    gi_isz = 2 if precision == "bf16" else 4

    def est_vmem(bb, tc):
        return (2 * bb * tc * Gp * gi_isz       # double-buffered gi blocks
                + 2 * bb * tc * Hp * 4          # double-buffered out blocks
                + Hp * Gp * gi_isz              # single-buffered resident W_hh^T
                + bb * Hp * 4                   # h scratch
                + 6 * bb * Gp * 4               # per-step gate temporaries
                + (2 << 20))                    # Mosaic internal headroom

    while est_vmem(Bb, Tc) > budget:
        if Bb > sub_align:
            Bb = max(sub_align, _round_up(Bb // 2, sub_align))
        elif Tc > 1:
            Tc = max(1, Tc // 2)
        else:
            break

    n_bblk = pl.cdiv(B, Bb)
    B_pad = n_bblk * Bb
    n_chunks = pl.cdiv(T, Tc)
    T_pad = n_chunks * Tc

    if B_pad != B or T_pad != T:
        gi = jnp.pad(gi, ((0, B_pad - B), (0, T_pad - T), (0, 0)))
    gi = gi.reshape(B_pad, T_pad * Gp)          # flat batch-major (free reshape)

    vmem_limit = int(min(budget, max(est_vmem(Bb, Tc), 32 * 1024 * 1024)))

    out_flat = pl.pallas_call(
        functools.partial(gru_chunk_kernel, tc=Tc, hp=Hp),
        out_shape=jax.ShapeDtypeStruct((B_pad, T_pad * Hp), f32),
        grid_spec=pltpu.PrefetchScalarGridSpec(
            num_scalar_prefetch=0,
            grid=(n_bblk, n_chunks),            # (parallel batch, sequential time)
            in_specs=[
                pl.BlockSpec((Bb, Tc * Gp), lambda b, c: (b, c)),            # gi chunk
                pl.BlockSpec((Hp, Gp), lambda b, c: (0, 0),
                             pipeline_mode=pl.Buffered(1)),                  # W_hh^T
                pl.BlockSpec((1, Hp), lambda b, c: (0, 0)),                  # b_hn
            ],
            out_specs=pl.BlockSpec((Bb, Tc * Hp), lambda b, c: (b, c)),
            scratch_shapes=[pltpu.VMEM((Bb, Hp), f32)],
        ),
        compiler_params=pltpu.CompilerParams(
            dimension_semantics=("parallel", "arbitrary"),
            vmem_limit_bytes=vmem_limit,
        ),
    )(gi, whh_t, b_hn)

    out = out_flat.reshape(B_pad, T_pad, Hp)[:B, :T, :H]    # crop batch/time/H padding
    hidden = out[:, T - 1, :][None]                         # (1, B, H) final state
    return out, hidden


def rnn_encoder_reference(x, w_ih, w_hh, b_ih, b_hh):
    """Pure-JAX GRU reference matching torch.nn.GRU(batch_first=True)."""
    B, T, D_in = x.shape
    H = w_hh.shape[1]
    wih_t = w_ih.T
    whh_t = w_hh.T
    h0 = jnp.zeros((B, H), jnp.float32)

    def step(h, x_t):
        gi = x_t @ wih_t + b_ih
        gh = h @ whh_t + b_hh
        i_r, i_z, i_n = gi[:, :H], gi[:, H:2 * H], gi[:, 2 * H:]
        h_r, h_z, h_n = gh[:, :H], gh[:, H:2 * H], gh[:, 2 * H:]
        r = jax.nn.sigmoid(i_r + h_r)
        z = jax.nn.sigmoid(i_z + h_z)
        n = jnp.tanh(i_n + r * h_n)
        h_new = (1.0 - z) * n + z * h
        return h_new, h_new

    h_T, outs = jax.lax.scan(step, h0, jnp.transpose(x, (1, 0, 2)))
    return jnp.transpose(outs, (1, 0, 2)), h_T[None]


if __name__ == "__main__":
    B, T, D_in, H = 2, 8, 4, 32

    key = jax.random.PRNGKey(0)
    k_x, k1, k2, k3, k4 = jax.random.split(key, 5)

    # Deterministic parameter init, PyTorch-style U(-1/sqrt(H), 1/sqrt(H)).
    bound = 1.0 / np.sqrt(H)
    x = jax.random.normal(k_x, (B, T, D_in), dtype=jnp.float32)
    w_ih = jax.random.uniform(k1, (3 * H, D_in), jnp.float32, -bound, bound)
    w_hh = jax.random.uniform(k2, (3 * H, H), jnp.float32, -bound, bound)
    b_ih = jax.random.uniform(k3, (3 * H,), jnp.float32, -bound, bound)
    b_hh = jax.random.uniform(k4, (3 * H,), jnp.float32, -bound, bound)

    # f32 path: matches the f32 reference to 1e-5.
    outputs, hidden = rnn_encoder_forward(x, w_ih, w_hh, b_ih, b_hh)
    jax.block_until_ready((outputs, hidden))

    ref_out, ref_hid = rnn_encoder_reference(x, w_ih, w_hh, b_ih, b_hh)
    np.testing.assert_allclose(np.asarray(outputs), np.asarray(ref_out),
                               rtol=1e-5, atol=1e-5)
    np.testing.assert_allclose(np.asarray(hidden), np.asarray(ref_hid),
                               rtol=1e-5, atol=1e-5)
    assert outputs.shape == (B, T, H) and hidden.shape == (1, B, H)

    # bf16 fast path (bf16 gi stream + bf16 recurrent MXU matmul, f32 gate math).
    out_bf, hid_bf = rnn_encoder_forward(x, w_ih, w_hh, b_ih, b_hh, precision="bf16")
    jax.block_until_ready((out_bf, hid_bf))
    np.testing.assert_allclose(np.asarray(out_bf), np.asarray(ref_out),
                               rtol=5e-2, atol=5e-2)
    assert out_bf.shape == (B, T, H) and hid_bf.shape == (1, B, H)

    # TODO(synk): multi-layer / bidirectional / LSTM-RNN variants of nn.RNNBase are not
    # implemented; this covers the single-layer unidirectional GRU the module builds.
    print("KERNEL_OK")
</pallas_src>

<mosaic_0001>
module attributes {stable_mosaic.version = 11 : i64} {
  func.func @gru_chunk_kernel(%arg0: i32, %arg1: i32, %arg2: memref<2x3072xf32, #tpu.memory_space<vmem>>, %arg3: memref<128x384xf32, #tpu.memory_space<vmem>>, %arg4: memref<1x128xf32, #tpu.memory_space<vmem>>, %arg5: memref<2x1024xf32, #tpu.memory_space<vmem>>, %arg6: memref<2x128xf32, #tpu.memory_space<vmem>>) attributes {dimension_semantics = [#tpu.dimension_semantics<parallel>, #tpu.dimension_semantics<arbitrary>], iteration_bounds = array<i64: 1, 1>, scalar_prefetch = 0 : i64, scratch_operands = 1 : i64, tpu.core_type = #tpu.core_type<tc>, window_params = [{transform_indices = @transform_0, window_bounds = array<i64: 2, 3072>}, {pipeline_mode = #tpu.pipeline_mode<synchronous>, transform_indices = @transform_1, window_bounds = array<i64: 128, 384>}, {pipeline_mode = #tpu.pipeline_mode<synchronous>, transform_indices = @transform_2, window_bounds = array<i64: 1, 128>}, {transform_indices = @transform_3, window_bounds = array<i64: 2, 1024>}]} {
    %c0_i32 = arith.constant 0 : i32
    %0 = arith.cmpi eq, %arg1, %c0_i32 : i32
    %1 = arith.extui %0 : i1 to i32
    %c0_i32_0 = arith.constant 0 : i32
    %2 = arith.cmpi ne, %1, %c0_i32_0 : i32
    scf.if %2 {
      %cst_51 = arith.constant 0.000000e+00 : f32
      %233 = vector.broadcast %cst_51 : f32 to vector<2x128xf32>
      %c0_52 = arith.constant 0 : index
      %c0_53 = arith.constant 0 : index
      %234 = vector.load %arg6[%c0_52, %c0_53] : memref<2x128xf32, #tpu.memory_space<vmem>>, vector<2x128xf32>
      tpu.vector_store %arg6[%c0_52, %c0_53], %233 {strides = array<i32>} : memref<2x128xf32, #tpu.memory_space<vmem>>, vector<2x128xf32>,
    } else {
    }
    %c0 = arith.constant 0 : index
    %c0_1 = arith.constant 0 : index
    %3 = vector.load %arg3[%c0, %c0_1] : memref<128x384xf32, #tpu.memory_space<vmem>>, vector<128x384xf32>
    %c0_2 = arith.constant 0 : index
    %c0_3 = arith.constant 0 : index
    %4 = vector.load %arg4[%c0_2, %c0_3] : memref<1x128xf32, #tpu.memory_space<vmem>>, vector<1x128xf32>
    %5 = vector.shape_cast %4 : vector<1x128xf32> to vector<1x128xf32>
    %6 = vector.broadcast %5 : vector<1x128xf32> to vector<2x128xf32>
    %c0_4 = arith.constant 0 : index
    %c0_5 = arith.constant 0 : index
    %7 = vector.load %arg6[%c0_4, %c0_5] : memref<2x128xf32, #tpu.memory_space<vmem>>, vector<2x128xf32>
    %c0_6 = arith.constant 0 : index
    %c0_7 = arith.constant 0 : index
    %8 = vector.load %arg2[%c0_6, %c0_7] : memref<2x3072xf32, #tpu.memory_space<vmem>>, vector<2x384xf32>
    %cst = arith.constant dense<0.000000e+00> : vector<2x384xf32>
    %9 = tpu.matmul %7, %3, %cst {dimension_numbers = #tpu.dot_dimension_numbers<[1], [0], [0], [1], [0, 0, 1, 1], [], []>} : vector<2x128xf32>, vector<128x384xf32>, vector<2x384xf32> -> vector<2x384xf32>
    %10 = vector.extract_strided_slice %8 {offsets = [0, 0], sizes = [2, 128], strides = [1, 1]} : vector<2x384xf32> to vector<2x128xf32>
    %11 = vector.extract_strided_slice %9 {offsets = [0, 0], sizes = [2, 128], strides = [1, 1]} : vector<2x384xf32> to vector<2x128xf32>
    %12 = arith.addf %10, %11 : vector<2x128xf32>
    %13 = arith.negf %12 : vector<2x128xf32>
    %14 = math.exp %13 : vector<2x128xf32>
    %cst_8 = arith.constant 1.000000e+00 : f32
    %15 = vector.broadcast %cst_8 : f32 to vector<2x128xf32>
    %16 = arith.addf %15, %14 : vector<2x128xf32>
    %17 = arith.divf %15, %16 : vector<2x128xf32>
    %18 = vector.extract_strided_slice %8 {offsets = [0, 128], sizes = [2, 128], strides = [1, 1]} : vector<2x384xf32> to vector<2x128xf32>
    %19 = vector.extract_strided_slice %9 {offsets = [0, 128], sizes = [2, 128], strides = [1, 1]} : vector<2x384xf32> to vector<2x128xf32>
    %20 = arith.addf %18, %19 : vector<2x128xf32>
    %21 = arith.negf %20 : vector<2x128xf32>
    %22 = math.exp %21 : vector<2x128xf32>
    %cst_9 = arith.constant 1.000000e+00 : f32
    %23 = vector.broadcast %cst_9 : f32 to vector<2x128xf32>
    %24 = arith.addf %23, %22 : vector<2x128xf32>
    %25 = arith.divf %23, %24 : vector<2x128xf32>
    %26 = vector.extract_strided_slice %8 {offsets = [0, 256], sizes = [2, 128], strides = [1, 1]} : vector<2x384xf32> to vector<2x128xf32>
    %27 = vector.extract_strided_slice %9 {offsets = [0, 256], sizes = [2, 128], strides = [1, 1]} : vector<2x384xf32> to vector<2x128xf32>
    %28 = arith.addf %27, %6 : vector<2x128xf32>
    %29 = arith.mulf %17, %28 : vector<2x128xf32>
    %30 = arith.addf %26, %29 : vector<2x128xf32>
    %31 = math.tanh %30 : vector<2x128xf32>
    %32 = arith.subf %7, %31 : vector<2x128xf32>
    %33 = arith.mulf %25, %32 : vector<2x128xf32>
    %34 = arith.addf %31, %33 : vector<2x128xf32>
    %c0_10 = arith.constant 0 : index
    %c0_11 = arith.constant 0 : index
    %35 = vector.load %arg5[%c0_10, %c0_11] : memref<2x1024xf32, #tpu.memory_space<vmem>>, vector<2x128xf32>
    tpu.vector_store %arg5[%c0_10, %c0_11], %34 {strides = array<i32>} : memref<2x1024xf32, #tpu.memory_space<vmem>>, vector<2x128xf32>,
    %c0_12 = arith.constant 0 : index
    %c384 = arith.constant 384 : index
    %36 = vector.load %arg2[%c0_12, %c384] : memref<2x3072xf32, #tpu.memory_space<vmem>>, vector<2x384xf32>
    %cst_13 = arith.constant dense<0.000000e+00> : vector<2x384xf32>
    %37 = tpu.matmul %34, %3, %cst_13 {dimension_numbers = #tpu.dot_dimension_numbers<[1], [0], [0], [1], [0, 0, 1, 1], [], []>} : vector<2x128xf32>, vector<128x384xf32>, vector<2x384xf32> -> vector<2x384xf32>
    %38 = vector.extract_strided_slice %36 {offsets = [0, 0], sizes = [2, 128], strides = [1, 1]} : vector<2x384xf32> to vector<2x128xf32>
    %39 = vector.extract_strided_slice %37 {offsets = [0, 0], sizes = [2, 128], strides = [1, 1]} : vector<2x384xf32> to vector<2x128xf32>
    %40 = arith.addf %38, %39 : vector<2x128xf32>
    %41 = arith.negf %40 : vector<2x128xf32>
    %42 = math.exp %41 : vector<2x128xf32>
    %cst_14 = arith.constant 1.000000e+00 : f32
    %43 = vector.broadcast %cst_14 : f32 to vector<2x128xf32>
    %44 = arith.addf %43, %42 : vector<2x128xf32>
    %45 = arith.divf %43, %44 : vector<2x128xf32>
    %46 = vector.extract_strided_slice %36 {offsets = [0, 128], sizes = [2, 128], strides = [1, 1]} : vector<2x384xf32> to vector<2x128xf32>
    %47 = vector.extract_strided_slice %37 {offsets = [0, 128], sizes = [2, 128], strides = [1, 1]} : vector<2x384xf32> to vector<2x128xf32>
    %48 = arith.addf %46, %47 : vector<2x128xf32>
    %49 = arith.negf %48 : vector<2x128xf32>
    %50 = math.exp %49 : vector<2x128xf32>
    %cst_15 = arith.constant 1.000000e+00 : f32
    %51 = vector.broadcast %cst_15 : f32 to vector<2x128xf32>
    %52 = arith.addf %51, %50 : vector<2x128xf32>
    %53 = arith.divf %51, %52 : vector<2x128xf32>
    %54 = vector.extract_strided_slice %36 {offsets = [0, 256], sizes = [2, 128], strides = [1, 1]} : vector<2x384xf32> to vector<2x128xf32>
    %55 = vector.extract_strided_slice %37 {offsets = [0, 256], sizes = [2, 128], strides = [1, 1]} : vector<2x384xf32> to vector<2x128xf32>
    %56 = arith.addf %55, %6 : vector<2x128xf32>
    %57 = arith.mulf %45, %56 : vector<2x128xf32>
    %58 = arith.addf %54, %57 : vector<2x128xf32>
    %59 = math.tanh %58 : vector<2x128xf32>
    %60 = arith.subf %34, %59 : vector<2x128xf32>
    %61 = arith.mulf %53, %60 : vector<2x128xf32>
    %62 = arith.addf %59, %61 : vector<2x128xf32>
    %c0_16 = arith.constant 0 : index
    %c128 = arith.constant 128 : index
    %63 = vector.load %arg5[%c0_16, %c128] : memref<2x1024xf32, #tpu.memory_space<vmem>>, vector<2x128xf32>
    tpu.vector_store %arg5[%c0_16, %c128], %62 {strides = array<i32>} : memref<2x1024xf32, #tpu.memory_space<vmem>>, vector<2x128xf32>,
    %c0_17 = arith.constant 0 : index
    %c768 = arith.constant 768 : index
    %64 = vector.load %arg2[%c0_17, %c768] : memref<2x3072xf32, #tpu.memory_space<vmem>>, vector<2x384xf32>
    %cst_18 = arith.constant dense<0.000000e+00> : vector<2x384xf32>
    %65 = tpu.matmul %62, %3, %cst_18 {dimension_numbers = #tpu.dot_dimension_numbers<[1], [0], [0], [1], [0, 0, 1, 1], [], []>} : vector<2x128xf32>, vector<128x384xf32>, vector<2x384xf32> -> vector<2x384xf32>
    %66 = vector.extract_strided_slice %64 {offsets = [0, 0], sizes = [2, 128], strides = [1, 1]} : vector<2x384xf32> to vector<2x128xf32>
    %67 = vector.extract_strided_slice %65 {offsets = [0, 0], sizes = [2, 128], strides = [1, 1]} : vector<2x384xf32> to vector<2x128xf32>
    %68 = arith.addf %66, %67 : vector<2x128xf32>
    %69 = arith.negf %68 : vector<2x128xf32>
    %70 = math.exp %69 : vector<2x128xf32>
    %cst_19 = arith.constant 1.000000e+00 : f32
    %71 = vector.broadcast %cst_19 : f32 to vector<2x128xf32>
    %72 = arith.addf %71, %70 : vector<2x128xf32>
    %73 = arith.divf %71, %72 : vector<2x128xf32>
    %74 = vector.extract_strided_slice %64 {offsets = [0, 128], sizes = [2, 128], strides = [1, 1]} : vector<2x384xf32> to vector<2x128xf32>
    %75 = vector.extract_strided_slice %65 {offsets = [0, 128], sizes = [2, 128], strides = [1, 1]} : vector<2x384xf32> to vector<2x128xf32>
    %76 = arith.addf %74, %75 : vector<2x128xf32>
    %77 = arith.negf %76 : vector<2x128xf32>
    %78 = math.exp %77 : vector<2x128xf32>
    %cst_20 = arith.constant 1.000000e+00 : f32
    %79 = vector.broadcast %cst_20 : f32 to vector<2x128xf32>
    %80 = arith.addf %79, %78 : vector<2x128xf32>
    %81 = arith.divf %79, %80 : vector<2x128xf32>
    %82 = vector.extract_strided_slice %64 {offsets = [0, 256], sizes = [2, 128], strides = [1, 1]} : vector<2x384xf32> to vector<2x128xf32>
    %83 = vector.extract_strided_slice %65 {offsets = [0, 256], sizes = [2, 128], strides = [1, 1]} : vector<2x384xf32> to vector<2x128xf32>
    %84 = arith.addf %83, %6 : vector<2x128xf32>
    %85 = arith.mulf %73, %84 : vector<2x128xf32>
    %86 = arith.addf %82, %85 : vector<2x128xf32>
    %87 = math.tanh %86 : vector<2x128xf32>
    %88 = arith.subf %62, %87 : vector<2x128xf32>
    %89 = arith.mulf %81, %88 : vector<2x128xf32>
    %90 = arith.addf %87, %89 : vector<2x128xf32>
    %c0_21 = arith.constant 0 : index
    %c256 = arith.constant 256 : index
    %91 = vector.load %arg5[%c0_21, %c256] : memref<2x1024xf32, #tpu.memory_space<vmem>>, vector<2x128xf32>
    tpu.vector_store %arg5[%c0_21, %c256], %90 {strides = array<i32>} : memref<2x1024xf32, #tpu.memory_space<vmem>>, vector<2x128xf32>,
    %c0_22 = arith.constant 0 : index
    %c1152 = arith.constant 1152 : index
    %92 = vector.load %arg2[%c0_22, %c1152] : memref<2x3072xf32, #tpu.memory_space<vmem>>, vector<2x384xf32>
    %cst_23 = arith.constant dense<0.000000e+00> : vector<2x384xf32>
    %93 = tpu.matmul %90, %3, %cst_23 {dimension_numbers = #tpu.dot_dimension_numbers<[1], [0], [0], [1], [0, 0, 1, 1], [], []>} : vector<2x128xf32>, vector<128x384xf32>, vector<2x384xf32> -> vector<2x384xf32>
    %94 = vector.extract_strided_slice %92 {offsets = [0, 0], sizes = [2, 128], strides = [1, 1]} : vector<2x384xf32> to vector<2x128xf32>
    %95 = vector.extract_strided_slice %93 {offsets = [0, 0], sizes = [2, 128], strides = [1, 1]} : vector<2x384xf32> to vector<2x128xf32>
    %96 = arith.addf %94, %95 : vector<2x128xf32>
    %97 = arith.negf %96 : vector<2x128xf32>
    %98 = math.exp %97 : vector<2x128xf32>
    %cst_24 = arith.constant 1.000000e+00 : f32
    %99 = vector.broadcast %cst_24 : f32 to vector<2x128xf32>
    %100 = arith.addf %99, %98 : vector<2x128xf32>
    %101 = arith.divf %99, %100 : vector<2x128xf32>
    %102 = vector.extract_strided_slice %92 {offsets = [0, 128], sizes = [2, 128], strides = [1, 1]} : vector<2x384xf32> to vector<2x128xf32>
    %103 = vector.extract_strided_slice %93 {offsets = [0, 128], sizes = [2, 128], strides = [1, 1]} : vector<2x384xf32> to vector<2x128xf32>
    %104 = arith.addf %102, %103 : vector<2x128xf32>
    %105 = arith.negf %104 : vector<2x128xf32>
    %106 = math.exp %105 : vector<2x128xf32>
    %cst_25 = arith.constant 1.000000e+00 : f32
    %107 = vector.broadcast %cst_25 : f32 to vector<2x128xf32>
    %108 = arith.addf %107, %106 : vector<2x128xf32>
    %109 = arith.divf %107, %108 : vector<2x128xf32>
    %110 = vector.extract_strided_slice %92 {offsets = [0, 256], sizes = [2, 128], strides = [1, 1]} : vector<2x384xf32> to vector<2x128xf32>
    %111 = vector.extract_strided_slice %93 {offsets = [0, 256], sizes = [2, 128], strides = [1, 1]} : vector<2x384xf32> to vector<2x128xf32>
    %112 = arith.addf %111, %6 : vector<2x128xf32>
    %113 = arith.mulf %101, %112 : vector<2x128xf32>
    %114 = arith.addf %110, %113 : vector<2x128xf32>
    %115 = math.tanh %114 : vector<2x128xf32>
    %116 = arith.subf %90, %115 : vector<2x128xf32>
    %117 = arith.mulf %109, %116 : vector<2x128xf32>
    %118 = arith.addf %115, %117 : vector<2x128xf32>
    %c0_26 = arith.constant 0 : index
    %c384_27 = arith.constant 384 : index
    %119 = vector.load %arg5[%c0_26, %c384_27] : memref<2x1024xf32, #tpu.memory_space<vmem>>, vector<2x128xf32>
    tpu.vector_store %arg5[%c0_26, %c384_27], %118 {strides = array<i32>} : memref<2x1024xf32, #tpu.memory_space<vmem>>, vector<2x128xf32>,
    %c0_28 = arith.constant 0 : index
    %c1536 = arith.constant 1536 : index
    %120 = vector.load %arg2[%c0_28, %c1536] : memref<2x3072xf32, #tpu.memory_space<vmem>>, vector<2x384xf32>
    %cst_29 = arith.constant dense<0.000000e+00> : vector<2x384xf32>
    %121 = tpu.matmul %118, %3, %cst_29 {dimension_numbers = #tpu.dot_dimension_numbers<[1], [0], [0], [1], [0, 0, 1, 1], [], []>} : vector<2x128xf32>, vector<128x384xf32>, vector<2x384xf32> -> vector<2x384xf32>
    %122 = vector.extract_strided_slice %120 {offsets = [0, 0], sizes = [2, 128], strides = [1, 1]} : vector<2x384xf32> to vector<2x128xf32>
    %123 = vector.extract_strided_slice %121 {offsets = [0, 0], sizes = [2, 128], strides = [1, 1]} : vector<2x384xf32> to vector<2x128xf32>
    %124 = arith.addf %122, %123 : vector<2x128xf32>
    %125 = arith.negf %124 : vector<2x128xf32>
    %126 = math.exp %125 : vector<2x128xf32>
    %cst_30 = arith.constant 1.000000e+00 : f32
    %127 = vector.broadcast %cst_30 : f32 to vector<2x128xf32>
    %128 = arith.addf %127, %126 : vector<2x128xf32>
    %129 = arith.divf %127, %128 : vector<2x128xf32>
    %130 = vector.extract_strided_slice %120 {offsets = [0, 128], sizes = [2, 128], strides = [1, 1]} : vector<2x384xf32> to vector<2x128xf32>
    %131 = vector.extract_strided_slice %121 {offsets = [0, 128], sizes = [2, 128], strides = [1, 1]} : vector<2x384xf32> to vector<2x128xf32>
    %132 = arith.addf %130, %131 : vector<2x128xf32>
    %133 = arith.negf %132 : vector<2x128xf32>
    %134 = math.exp %133 : vector<2x128xf32>
    %cst_31 = arith.constant 1.000000e+00 : f32
    %135 = vector.broadcast %cst_31 : f32 to vector<2x128xf32>
    %136 = arith.addf %135, %134 : vector<2x128xf32>
    %137 = arith.divf %135, %136 : vector<2x128xf32>
    %138 = vector.extract_strided_slice %120 {offsets = [0, 256], sizes = [2, 128], strides = [1, 1]} : vector<2x384xf32> to vector<2x128xf32>
    %139 = vector.extract_strided_slice %121 {offsets = [0, 256], sizes = [2, 128], strides = [1, 1]} : vector<2x384xf32> to vector<2x128xf32>
    %140 = arith.addf %139, %6 : vector<2x128xf32>
    %141 = arith.mulf %129, %140 : vector<2x128xf32>
    %142 = arith.addf %138, %141 : vector<2x128xf32>
    %143 = math.tanh %142 : vector<2x128xf32>
    %144 = arith.subf %118, %143 : vector<2x128xf32>
    %145 = arith.mulf %137, %144 : vector<2x128xf32>
    %146 = arith.addf %143, %145 : vector<2x128xf32>
    %c0_32 = arith.constant 0 : index
    %c512 = arith.constant 512 : index
    %147 = vector.load %arg5[%c0_32, %c512] : memref<2x1024xf32, #tpu.memory_space<vmem>>, vector<2x128xf32>
    tpu.vector_store %arg5[%c0_32, %c512], %146 {strides = array<i32>} : memref<2x1024xf32, #tpu.memory_space<vmem>>, vector<2x128xf32>,
    %c0_33 = arith.constant 0 : index
    %c1920 = arith.constant 1920 : index
    %148 = vector.load %arg2[%c0_33, %c1920] : memref<2x3072xf32, #tpu.memory_space<vmem>>, vector<2x384xf32>
    %cst_34 = arith.constant dense<0.000000e+00> : vector<2x384xf32>
    %149 = tpu.matmul %146, %3, %cst_34 {dimension_numbers = #tpu.dot_dimension_numbers<[1], [0], [0], [1], [0, 0, 1, 1], [], []>} : vector<2x128xf32>, vector<128x384xf32>, vector<2x384xf32> -> vector<2x384xf32>
    %150 = vector.extract_strided_slice %148 {offsets = [0, 0], sizes = [2, 128], strides = [1, 1]} : vector<2x384xf32> to vector<2x128xf32>
    %151 = vector.extract_strided_slice %149 {offsets = [0, 0], sizes = [2, 128], strides = [1, 1]} : vector<2x384xf32> to vector<2x128xf32>
    %152 = arith.addf %150, %151 : vector<2x128xf32>
    %153 = arith.negf %152 : vector<2x128xf32>
    %154 = math.exp %153 : vector<2x128xf32>
    %cst_35 = arith.constant 1.000000e+00 : f32
    %155 = vector.broadcast %cst_35 : f32 to vector<2x128xf32>
    %156 = arith.addf %155, %154 : vector<2x128xf32>
    %157 = arith.divf %155, %156 : vector<2x128xf32>
    %158 = vector.extract_strided_slice %148 {offsets = [0, 128], sizes = [2, 128], strides = [1, 1]} : vector<2x384xf32> to vector<2x128xf32>
    %159 = vector.extract_strided_slice %149 {offsets = [0, 128], sizes = [2, 128], strides = [1, 1]} : vector<2x384xf32> to vector<2x128xf32>
    %160 = arith.addf %158, %159 : vector<2x128xf32>
    %161 = arith.negf %160 : vector<2x128xf32>
    %162 = math.exp %161 : vector<2x128xf32>
    %cst_36 = arith.constant 1.000000e+00 : f32
    %163 = vector.broadcast %cst_36 : f32 to vector<2x128xf32>
    %164 = arith.addf %163, %162 : vector<2x128xf32>
    %165 = arith.divf %163, %164 : vector<2x128xf32>
    %166 = vector.extract_strided_slice %148 {offsets = [0, 256], sizes = [2, 128], strides = [1, 1]} : vector<2x384xf32> to vector<2x128xf32>
    %167 = vector.extract_strided_slice %149 {offsets = [0, 256], sizes = [2, 128], strides = [1, 1]} : vector<2x384xf32> to vector<2x128xf32>
    %168 = arith.addf %167, %6 : vector<2x128xf32>
    %169 = arith.mulf %157, %168 : vector<2x128xf32>
    %170 = arith.addf %166, %169 : vector<2x128xf32>
    %171 = math.tanh %170 : vector<2x128xf32>
    %172 = arith.subf %146, %171 : vector<2x128xf32>
    %173 = arith.mulf %165, %172 : vector<2x128xf32>
    %174 = arith.addf %171, %173 : vector<2x128xf32>
    %c0_37 = arith.constant 0 : index
    %c640 = arith.constant 640 : index
    %175 = vector.load %arg5[%c0_37, %c640] : memref<2x1024xf32, #tpu.memory_space<vmem>>, vector<2x128xf32>
    tpu.vector_store %arg5[%c0_37, %c640], %174 {strides = array<i32>} : memref<2x1024xf32, #tpu.memory_space<vmem>>, vector<2x128xf32>,
    %c0_38 = arith.constant 0 : index
    %c2304 = arith.constant 2304 : index
    %176 = vector.load %arg2[%c0_38, %c2304] : memref<2x3072xf32, #tpu.memory_space<vmem>>, vector<2x384xf32>
    %cst_39 = arith.constant dense<0.000000e+00> : vector<2x384xf32>
    %177 = tpu.matmul %174, %3, %cst_39 {dimension_numbers = #tpu.dot_dimension_numbers<[1], [0], [0], [1], [0, 0, 1, 1], [], []>} : vector<2x128xf32>, vector<128x384xf32>, vector<2x384xf32> -> vector<2x384xf32>
    %178 = vector.extract_strided_slice %176 {offsets = [0, 0], sizes = [2, 128], strides = [1, 1]} : vector<2x384xf32> to vector<2x128xf32>
    %179 = vector.extract_strided_slice %177 {offsets = [0, 0], sizes = [2, 128], strides = [1, 1]} : vector<2x384xf32> to vector<2x128xf32>
    %180 = arith.addf %178, %179 : vector<2x128xf32>
    %181 = arith.negf %180 : vector<2x128xf32>
    %182 = math.exp %181 : vector<2x128xf32>
    %cst_40 = arith.constant 1.000000e+00 : f32
    %183 = vector.broadcast %cst_40 : f32 to vector<2x128xf32>
    %184 = arith.addf %183, %182 : vector<2x128xf32>
    %185 = arith.divf %183, %184 : vector<2x128xf32>
    %186 = vector.extract_strided_slice %176 {offsets = [0, 128], sizes = [2, 128], strides = [1, 1]} : vector<2x384xf32> to vector<2x128xf32>
    %187 = vector.extract_strided_slice %177 {offsets = [0, 128], sizes = [2, 128], strides = [1, 1]} : vector<2x384xf32> to vector<2x128xf32>
    %188 = arith.addf %186, %187 : vector<2x128xf32>
    %189 = arith.negf %188 : vector<2x128xf32>
    %190 = math.exp %189 : vector<2x128xf32>
    %cst_41 = arith.constant 1.000000e+00 : f32
    %191 = vector.broadcast %cst_41 : f32 to vector<2x128xf32>
    %192 = arith.addf %191, %190 : vector<2x128xf32>
    %193 = arith.divf %191, %192 : vector<2x128xf32>
    %194 = vector.extract_strided_slice %176 {offsets = [0, 256], sizes = [2, 128], strides = [1, 1]} : vector<2x384xf32> to vector<2x128xf32>
    %195 = vector.extract_strided_slice %177 {offsets = [0, 256], sizes = [2, 128], strides = [1, 1]} : vector<2x384xf32> to vector<2x128xf32>
    %196 = arith.addf %195, %6 : vector<2x128xf32>
    %197 = arith.mulf %185, %196 : vector<2x128xf32>
    %198 = arith.addf %194, %197 : vector<2x128xf32>
    %199 = math.tanh %198 : vector<2x128xf32>
    %200 = arith.subf %174, %199 : vector<2x128xf32>
    %201 = arith.mulf %193, %200 : vector<2x128xf32>
    %202 = arith.addf %199, %201 : vector<2x128xf32>
    %c0_42 = arith.constant 0 : index
    %c768_43 = arith.constant 768 : index
    %203 = vector.load %arg5[%c0_42, %c768_43] : memref<2x1024xf32, #tpu.memory_space<vmem>>, vector<2x128xf32>
    tpu.vector_store %arg5[%c0_42, %c768_43], %202 {strides = array<i32>} : memref<2x1024xf32, #tpu.memory_space<vmem>>, vector<2x128xf32>,
    %c0_44 = arith.constant 0 : index
    %c2688 = arith.constant 2688 : index
    %204 = vector.load %arg2[%c0_44, %c2688] : memref<2x3072xf32, #tpu.memory_space<vmem>>, vector<2x384xf32>
    %cst_45 = arith.constant dense<0.000000e+00> : vector<2x384xf32>
    %205 = tpu.matmul %202, %3, %cst_45 {dimension_numbers = #tpu.dot_dimension_numbers<[1], [0], [0], [1], [0, 0, 1, 1], [], []>} : vector<2x128xf32>, vector<128x384xf32>, vector<2x384xf32> -> vector<2x384xf32>
    %206 = vector.extract_strided_slice %204 {offsets = [0, 0], sizes = [2, 128], strides = [1, 1]} : vector<2x384xf32> to vector<2x128xf32>
    %207 = vector.extract_strided_slice %205 {offsets = [0, 0], sizes = [2, 128], strides = [1, 1]} : vector<2x384xf32> to vector<2x128xf32>
    %208 = arith.addf %206, %207 : vector<2x128xf32>
    %209 = arith.negf %208 : vector<2x128xf32>
    %210 = math.exp %209 : vector<2x128xf32>
    %cst_46 = arith.constant 1.000000e+00 : f32
    %211 = vector.broadcast %cst_46 : f32 to vector<2x128xf32>
    %212 = arith.addf %211, %210 : vector<2x128xf32>
    %213 = arith.divf %211, %212 : vector<2x128xf32>
    %214 = vector.extract_strided_slice %204 {offsets = [0, 128], sizes = [2, 128], strides = [1, 1]} : vector<2x384xf32> to vector<2x128xf32>
    %215 = vector.extract_strided_slice %205 {offsets = [0, 128], sizes = [2, 128], strides = [1, 1]} : vector<2x384xf32> to vector<2x128xf32>
    %216 = arith.addf %214, %215 : vector<2x128xf32>
    %217 = arith.negf %216 : vector<2x128xf32>
    %218 = math.exp %217 : vector<2x128xf32>
    %cst_47 = arith.constant 1.000000e+00 : f32
    %219 = vector.broadcast %cst_47 : f32 to vector<2x128xf32>
    %220 = arith.addf %219, %218 : vector<2x128xf32>
    %221 = arith.divf %219, %220 : vector<2x128xf32>
    %222 = vector.extract_strided_slice %204 {offsets = [0, 256], sizes = [2, 128], strides = [1, 1]} : vector<2x384xf32> to vector<2x128xf32>
    %223 = vector.extract_strided_slice %205 {offsets = [0, 256], sizes = [2, 128], strides = [1, 1]} : vector<2x384xf32> to vector<2x128xf32>
    %224 = arith.addf %223, %6 : vector<2x128xf32>
    %225 = arith.mulf %213, %224 : vector<2x128xf32>
    %226 = arith.addf %222, %225 : vector<2x128xf32>
    %227 = math.tanh %226 : vector<2x128xf32>
    %228 = arith.subf %202, %227 : vector<2x128xf32>
    %229 = arith.mulf %221, %228 : vector<2x128xf32>
    %230 = arith.addf %227, %229 : vector<2x128xf32>
    %c0_48 = arith.constant 0 : index
    %c896 = arith.constant 896 : index
    %231 = vector.load %arg5[%c0_48, %c896] : memref<2x1024xf32, #tpu.memory_space<vmem>>, vector<2x128xf32>
    tpu.vector_store %arg5[%c0_48, %c896], %230 {strides = array<i32>} : memref<2x1024xf32, #tpu.memory_space<vmem>>, vector<2x128xf32>,
    %c0_49 = arith.constant 0 : index
    %c0_50 = arith.constant 0 : index
    %232 = vector.load %arg6[%c0_49, %c0_50] : memref<2x128xf32, #tpu.memory_space<vmem>>, vector<2x128xf32>
    tpu.vector_store %arg6[%c0_49, %c0_50], %230 {strides = array<i32>} : memref<2x128xf32, #tpu.memory_space<vmem>>, vector<2x128xf32>,
    return
  }
  func.func @transform_0(%arg0: i32, %arg1: i32) -> (i32, i32) {
    %c0_i32 = arith.constant 0 : i32
    return %arg0, %arg1 : i32, i32
  }
  func.func @transform_1(%arg0: i32, %arg1: i32) -> (i32, i32) {
    %c0_i32 = arith.constant 0 : i32
    %c0_i32_0 = arith.constant 0 : i32
    %c0_i32_1 = arith.constant 0 : i32
    return %c0_i32, %c0_i32_0 : i32, i32
  }
  func.func @transform_2(%arg0: i32, %arg1: i32) -> (i32, i32) {
    %c0_i32 = arith.constant 0 : i32
    %c0_i32_0 = arith.constant 0 : i32
    %c0_i32_1 = arith.constant 0 : i32
    return %c0_i32, %c0_i32_0 : i32, i32
  }
  func.func @transform_3(%arg0: i32, %arg1: i32) -> (i32, i32) {
    %c0_i32 = arith.constant 0 : i32
    return %arg0, %arg1 : i32, i32
  }
}

</mosaic_0001>

<bundles_post_ra>
// kernel: tpu_custom_call.1
= control target key start
LH: loop header
LB: loop body
LE: loop exit
PB: predicated region body
PF: predicated region fallthrough
CT: control target
= control target key end

     0   :  { %8 = vsyncpa [#allocation4], 0  ;;  %s2966_s0 = inlined_call_operand.hbm [shape: f32[2,3072], index: 0, kind: input, shape index: {}]   ;;  %s2967_s1 = inlined_call_operand.hbm [shape: f32[128,384], index: 1, kind: input, shape index: {}]   ;;  %s2968_s2 = inlined_call_operand.vmem [shape: f32[1,128], index: 2, kind: input, shape index: {}]   ;;  %s2969_s3 = inlined_call_operand.hbm [shape: f32[2,1024], index: 3, kind: output, shape index: {}]  }
   0x1   :  { %9 = vsyncpa [#allocation7], 0 }
   0x2   :  { %10 = vsyncpa [#allocation5], 0  ;;  %s2512_s12 = smov [#allocation3]   ;;  %s2513_s14 = smov [#allocation6]  }
   0x3   :  { %s17_s13 = sshll.u32 %s2512_s12, 4  ;;  %s26_s15 = sshll.u32 %s2513_s14, 4  ;;  %s18_s13 = int_to_ptr.vmem [resolvable:$true] %s17_s13  ;;  %s2540_s15 = int_to_ptr.vmem [resolvable:$true] %s26_s15 }
   0x4   :  { %s2440_s18 = scalar_lea.hbm %s2966_s0, 768 }
   0x5   :  { %p2441_p0 = scmp.ne.s32.totalorder %s2966_s0, %s2440_s18  ;;  %p2444_p1 = scmp.lt.u32.totalorder %s2440_s18, %s2966_s0 }
   0x7   :  { %p2446_p2 = pnand %p2444_p1, %p2441_p0 }
   0x9   :  { %2449 = shalt.err (!%p2446_p2)
}
   0xa   :  { %s2450_s23 = scalar_lea.vmem %s18_s13, 768  ;;  %p2455_p4 = scmp.lt.s32.totalorder %s18_s13, %s18_s13 }
   0xb   :  { %p2451_p3 = scmp.ne.s32.totalorder %s18_s13, %s2450_s23  ;;  %p2456_p5 = scmp.lt.s32.totalorder %s2450_s23, %s2450_s23 }
   0xd   :  { %p2457_p6 = por %p2456_p5, %p2455_p4 }
   0xf   :  { %p2458_p7 = pnand %p2457_p6, %p2451_p3 }
  0x11   :  { %2461 = shalt.err (!%p2458_p7)
}
  0x12   :  { %20 = dma.hbm_to_vmem [thread:$0]  %s2966_s0, 768, %s18_s13, [#allocation4]  }
  0x13   :  { %s2462_s28 = scalar_lea.hbm %s2967_s1, 6144 }
  0x14   :  { %p2463_p8 = scmp.ne.s32.totalorder %s2967_s1, %s2462_s28  ;;  %p2466_p9 = scmp.lt.u32.totalorder %s2462_s28, %s2967_s1 }
  0x16   :  { %p2468_p10 = pnand %p2466_p9, %p2463_p8 }
  0x18   :  { %2471 = shalt.err (!%p2468_p10)
}
  0x19   :  { %s2472_s6 = scalar_lea.vmem %s2540_s15, 6144  ;;  %p2477_p12 = scmp.lt.s32.totalorder %s2540_s15, %s2540_s15 }
  0x1a   :  { %p2473_p11 = scmp.ne.s32.totalorder %s2540_s15, %s2472_s6  ;;  %p2478_p13 = scmp.lt.s32.totalorder %s2472_s6, %s2472_s6 }
  0x1c   :  { %p2479_p0 = por %p2478_p13, %p2477_p12 }
  0x1e   :  { %p2480_p1 = pnand %p2479_p0, %p2473_p11 }
  0x20   :  { %2483 = shalt.err (!%p2480_p1)
}
  0x21   :  { %s2514_s0 = smov 384   ;;  %s2515_s7 = smov 24  }
  0x22   :  { %32 = dma.hbm_to_vmem [thread:$0]  %s2967_s1, 6144, %s2540_s15, [#allocation7], %s2514_s0, %s2514_s0, %s2515_s7  }
  0x23   :  { %2506 = dma.done.wait [#allocation4], 768  }
  0x24   :  { %2507 = vsyncadd [#allocation4], 4294966528 }
  0x25   :  { %2508 = dma.done.wait [#allocation7], 6144  }
  0x26   :  { %2509 = vsyncadd [#allocation7], 4294961152  ;;  %v2516_v0 = vmov 0.0|0.0   ;;  %v2517_v1 = vmov 0.0   ;;  %vm2518_vm0 = vmmov 0   ;;  %v47_v2 = vld [vmem:[#allocation6 + $0x8] sm:$0xff] }
  0x27   :  { %1936 = vmatprep.subr.bf16.mxu1 %v2516_v0  ;;  %167 = vmatprep.mubr.f32.mxu0 %v2517_v1  ;;  %45 = vst [vmem:[#allocation2] sm:$0x3] %v2517_v1  ;;  %v50_v3 = vld [vmem:[#allocation6 + $0x20] sm:$0xff]  ;;  %v49_v6 = vld [vmem:[#allocation6 + $0x18] sm:$0xff]  ;;  %v56_v8 = vld [vmem:[#allocation6 + $0x50] sm:$0xff] }
  0x28   :  { %1656 = vmatprep.mubr.msk.f32.mxu1 %vm2518_vm0, %v2517_v1  ;;  %v46_v4 = vld [vmem:[#allocation6] sm:$0xff]  ;;  %v2576_v5 = vpack.c.bf16 %v50_v3, %v47_v2  ;;  %v53_v7 = vld [vmem:[#allocation6 + $0x38] sm:$0xff]  ;;  %v52_v11 = vld [vmem:[#allocation6 + $0x30] sm:$0xff] }
  0x29   :  { %v2578_v9 = vpack.c.bf16 %v49_v6, %v46_v4  ;;  %v2580_v10 = vpack.c.bf16 %v56_v8, %v53_v7  ;;  %v55_v12 = vld [vmem:[#allocation6 + $0x48] sm:$0xff]  ;;  %v62_v14 = vld [vmem:[#allocation6 + $0x80] sm:$0xff]  ;;  %v61_v18 = vld [vmem:[#allocation6 + $0x78] sm:$0xff] }
  0x2a   :  { %v59_v13 = vld [vmem:[#allocation6 + $0x68] sm:$0xff]  ;;  %1905 = vmatprep.subr.bf16.mxu0 %v2576_v5  ;;  %v2584_v15 = vpack.c.bf16 %v55_v12, %v52_v11  ;;  %v58_v17 = vld [vmem:[#allocation6 + $0x60] sm:$0xff]  ;;  %v65_v19 = vld [vmem:[#allocation6 + $0x98] sm:$0xff] }
  0x2b   :  { %1907 = vmatpush1.bf16.msra.mxu0 %v2578_v9  ;;  %v2587_v16 = vpack.c.bf16 %v62_v14, %v59_v13  ;;  %v68_v20 = vld [vmem:[#allocation6 + $0xb0] sm:$0xff]  ;;  %v2590_v21 = vpack.c.bf16 %v61_v18, %v58_v17  ;;  %v67_v24 = vld [vmem:[#allocation6 + $0xa8] sm:$0xff]  ;;  %v74_v28 = vld [vmem:[#allocation6 + $0xe0] sm:$0xff] }
  0x2c   :  { %1909 = vmatprep.subr.bf16.mxu0 %v2580_v10  ;;  %v64_v22 = vld [vmem:[#allocation6 + $0x90] sm:$0xff]  ;;  %v2593_v23 = vpack.c.bf16 %v68_v20, %v65_v19  ;;  %v51_v26 = vld [vmem:[#allocation6 + $0x28] sm:$0xff]  ;;  %v54_v30 = vld [vmem:[#allocation6 + $0x40] sm:$0xff] }
  0x2d   :  { %v48_v25 = vld [vmem:[#allocation6 + $0x10] sm:$0xff]  ;;  %v71_v27 = vld [vmem:[#allocation6 + $0xc8] sm:$0xff]  ;;  %v57_v31 = vld [vmem:[#allocation6 + $0x58] sm:$0xff]  ;;  %v2598_v32 = vpack.c.bf16 %v67_v24, %v64_v22 }
  0x2e   :  { %v2595_v29 = vpack.c.bf16 %v51_v26, %v48_v25  ;;  %v70_v33 = vld [vmem:[#allocation6 + $0xc0] sm:$0xff]  ;;  %v2601_v34 = vpack.c.bf16 %v57_v31, %v54_v30  ;;  %v2604_v35 = vpack.c.bf16 %v74_v28, %v71_v27  ;;  %v73_v36 = vld [vmem:[#allocation6 + $0xd8] sm:$0xff]  ;;  %v60_v37 = vld [vmem:[#allocation6 + $0x70] sm:$0xff] }
  0x2f   :  { %1911 = vmatpush1.bf16.msra.mxu0 %v2584_v15  ;;  %v63_v38 = vld [vmem:[#allocation6 + $0x88] sm:$0xff]  ;;  %v77_v39 = vld [vmem:[#allocation6 + $0xf8] sm:$0xff]  ;;  %v80_v40 = vld [vmem:[#allocation6 + $0x110] sm:$0xff]  ;;  %v2608_v41 = vpack.c.bf16 %v73_v36, %v70_v33 }
  0x30   :  { %1913 = vmatprep.subr.bf16.mxu0 %v2587_v16  ;;  %1938 = vmatpush3.bf16.msra.mxu1 %v2595_v29  ;;  %v76_v42 = vld [vmem:[#allocation6 + $0xf0] sm:$0xff]  ;;  %v2611_v43 = vpack.c.bf16 %v63_v38, %v60_v37  ;;  %v2614_v44 = vpack.c.bf16 %v80_v40, %v77_v39  ;;  %v79_v45 = vld [vmem:[#allocation6 + $0x108] sm:$0xff]  ;;  %v66_v46 = vld [vmem:[#allocation6 + $0xa0] sm:$0xff] }
  0x31   :  { %1939 = vmatprep.subr.bf16.mxu1 %v2516_v0  ;;  %v69_v47 = vld [vmem:[#allocation6 + $0xb8] sm:$0xff]  ;;  %v83_v48 = vld [vmem:[#allocation6 + $0x128] sm:$0xff]  ;;  %v86_v49 = vld [vmem:[#allocation6 + $0x140] sm:$0xff]  ;;  %v2618_v50 = vpack.c.bf16 %v79_v45, %v76_v42 }
  0x32   :  { %v82_v51 = vld [vmem:[#allocation6 + $0x120] sm:$0xff]  ;;  %v2621_v52 = vpack.c.bf16 %v69_v47, %v66_v46  ;;  %v2624_v53 = vpack.c.bf16 %v86_v49, %v83_v48  ;;  %v85_v54 = vld [vmem:[#allocation6 + $0x138] sm:$0xff]  ;;  %v72_v55 = vld [vmem:[#allocation6 + $0xd0] sm:$0xff] }
  0x33   :  { %1915 = vmatpush1.bf16.msra.mxu0 %v2590_v21  ;;  %v75_v56 = vld [vmem:[#allocation6 + $0xe8] sm:$0xff]  ;;  %v89_v57 = vld [vmem:[#allocation6 + $0x158] sm:$0xff]  ;;  %v92_v58 = vld [vmem:[#allocation6 + $0x170] sm:$0xff]  ;;  %v2628_v59 = vpack.c.bf16 %v85_v54, %v82_v51 }
  0x34   :  { %1917 = vmatprep.subr.bf16.mxu0 %v2593_v23  ;;  %1941 = vmatpush3.bf16.msra.mxu1 %v2601_v34  ;;  %v88_v60 = vld [vmem:[#allocation6 + $0x150] sm:$0xff]  ;;  %v2631_v61 = vpack.c.bf16 %v75_v56, %v72_v55  ;;  %v2634_v62 = vpack.c.bf16 %v92_v58, %v89_v57  ;;  %v91_v63 = vld [vmem:[#allocation6 + $0x168] sm:$0xff]  ;;  %v78_v2 = vld [vmem:[#allocation6 + $0x100] sm:$0xff] }
  0x35   :  { %1942 = vmatprep.subr.bf16.mxu1 %v2516_v0  ;;  %v81_v3 = vld [vmem:[#allocation6 + $0x118] sm:$0xff]  ;;  %v2638_v4 = vpack.c.bf16 %v91_v63, %v88_v60  ;;  %v84_v7 = vld [vmem:[#allocation6 + $0x130] sm:$0xff]  ;;  %v87_v8 = vld [vmem:[#allocation6 + $0x148] sm:$0xff] }
  0x36   :  { %v2641_v6 = vpack.c.bf16 %v81_v3, %v78_v2  ;;  %v2646_v11 = vld [vmem:[#allocation2] sm:$0x3]  ;;  %v2649_v12 = vpack.c.bf16 %v87_v8, %v84_v7  ;;  %v90_v13 = vld [vmem:[#allocation6 + $0x160] sm:$0xff]  ;;  %v93_v14 = vld [vmem:[#allocation6 + $0x178] sm:$0xff] }
  0x37   :  { %1919 = vmatpush1.bf16.msra.mxu0 %v2598_v32  ;;  %v2655_v17 = vpack.c.bf16 %v93_v14, %v90_v13  ;;  %v102_v18 = vld [vmem:[#allocation3] sm:$0x3f]  ;;  %v2699_v36 = vld [vmem:[%s2968_s2] ss:$0 sm:$0xff]  ;;  %v271_v55 = vld [vmem:[#allocation3 + $0x6] sm:$0x3f] }
  0x38   :  { %1921 = vmatprep.subr.bf16.mxu0 %v2604_v35  ;;  %1944 = vmatpush3.bf16.msra.mxu1 %v2611_v43  ;;  %v252_v25 = vrot.slane %v102_v18, 2  ;;  %v263_v39 = vrot.slane %v102_v18, 4  ;;  %v421_v3 = vrot.slane %v271_v55, 2  ;;  %s2519_s2 = smov [#allocation8]  }
  0x39   :  { %1945 = vmatprep.subr.bf16.mxu1 %v2516_v0  ;;  %s1461_s11 = sshll.u32 %s2519_s2, 4  ;;  %s1462_s11 = int_to_ptr.vmem [resolvable:$true] %s1461_s11 }
  0x3a   :  { %s2484_s12 = scalar_lea.vmem %s1462_s11, 256  ;;  %p2489_p3 = scmp.lt.s32.totalorder %s1462_s11, %s1462_s11 }
  0x3b   :  { %1923 = vmatpush1.bf16.msra.mxu0 %v2608_v41  ;;  %p2485_p2 = scmp.ne.s32.totalorder %s1462_s11, %s2484_s12  ;;  %p2490_p4 = scmp.lt.s32.totalorder %s2484_s12, %s2484_s12 }
  0x3c   :  { %1925 = vmatprep.subr.bf16.mxu0 %v2614_v44  ;;  %1947 = vmatpush3.bf16.msra.mxu1 %v2621_v52 }
  0x3d   :  { %1948 = vmatprep.subr.bf16.mxu1 %v2516_v0  ;;  %p2491_p5 = por %p2490_p4, %p2489_p3 }
  0x3f   :  { %1927 = vmatpush1.bf16.msra.mxu0 %v2618_v50  ;;  %p2492_p6 = pnand %p2491_p5, %p2485_p2 }
  0x40   :  { %1929 = vmatprep.subr.bf16.mxu0 %v2624_v53  ;;  %1950 = vmatpush3.bf16.msra.mxu1 %v2631_v61 }
  0x41   :  { %1951 = vmatprep.subr.bf16.mxu1 %v2516_v0 }
  0x43   :  { %1931 = vmatpush1.bf16.msra.mxu0 %v2628_v59 }
  0x44   :  { %1933 = vmatprep.subr.bf16.mxu0 %v2634_v62  ;;  %1953 = vmatpush3.bf16.msra.mxu1 %v2641_v6 }
  0x45   :  { %1954 = vmatprep.subr.bf16.mxu1 %v2516_v0 }
  0x47   :  { %1935 = vmatpush1.bf16.msra.mxu0 %v2638_v4 }
  0x48   :  { %1961 = vmatprep.subr.bf16.mxu0 %v2576_v5  ;;  %1956 = vmatpush3.bf16.msra.mxu1 %v2649_v12 }
  0x49   :  { %1957 = vmatprep.subr.bf16.mxu1 %v2516_v0 }
  0x4a   :  { %168 = vmatmul.mubr.f32.vlgmr.msra.gmra.mrb[0].mxu0 %v2646_v11 }
  0x4b   :  { %1963 = vmatpush1.bf16.msra.mxu0 %v2578_v9  ;;  %336 = vmatprep.mubr.f32.mxu0 %v2517_v1 }
  0x4c   :  { %1965 = vmatprep.subr.bf16.mxu0 %v2580_v10  ;;  %1959 = vmatpush3.bf16.msra.mxu1 %v2655_v17 }
  0x4d   :  { %1992 = vmatprep.subr.bf16.mxu1 %v2516_v0 }
  0x4f   :  { %1967 = vmatpush1.bf16.msra.mxu0 %v2584_v15  ;;  %1657 = vmatmul.mubr.f32.vlgmr.msra.gmra.mrb[0].mxu1 %v2646_v11 }
  0x50   :  { %1969 = vmatprep.subr.bf16.mxu0 %v2587_v16  ;;  %1994 = vmatpush3.bf16.msra.mxu1 %v2595_v29 }
  0x51   :  { %1995 = vmatprep.subr.bf16.mxu1 %v2516_v0  ;;  %1691 = vmatprep.mubr.msk.f32.mxu1 %vm2518_vm0, %v2517_v1 }
  0x53   :  { %1971 = vmatpush1.bf16.msra.mxu0 %v2590_v21 }
  0x54   :  { %1973 = vmatprep.subr.bf16.mxu0 %v2593_v23  ;;  %1997 = vmatpush3.bf16.msra.mxu1 %v2601_v34 }
  0x55   :  { %1998 = vmatprep.subr.bf16.mxu1 %v2516_v0 }
  0x57   :  { %1975 = vmatpush1.bf16.msra.mxu0 %v2598_v32 }
  0x58   :  { %1977 = vmatprep.subr.bf16.mxu0 %v2604_v35  ;;  %2000 = vmatpush3.bf16.msra.mxu1 %v2611_v43 }
  0x59   :  { %2001 = vmatprep.subr.bf16.mxu1 %v2516_v0 }
  0x5b   :  { %1979 = vmatpush1.bf16.msra.mxu0 %v2608_v41 }
  0x5c   :  { %1981 = vmatprep.subr.bf16.mxu0 %v2614_v44  ;;  %2003 = vmatpush3.bf16.msra.mxu1 %v2621_v52 }
  0x5d   :  { %2004 = vmatprep.subr.bf16.mxu1 %v2516_v0 }
  0x5f   :  { %1983 = vmatpush1.bf16.msra.mxu0 %v2618_v50 }
  0x60   :  { %1985 = vmatprep.subr.bf16.mxu0 %v2624_v53  ;;  %2006 = vmatpush3.bf16.msra.mxu1 %v2631_v61 }
  0x61   :  { %2007 = vmatprep.subr.bf16.mxu1 %v2516_v0 }
  0x63   :  { %1987 = vmatpush1.bf16.msra.mxu0 %v2628_v59 }
  0x64   :  { %1989 = vmatprep.subr.bf16.mxu0 %v2634_v62  ;;  %2009 = vmatpush3.bf16.msra.mxu1 %v2641_v6 }
  0x65   :  { %2010 = vmatprep.subr.bf16.mxu1 %v2516_v0 }
  0x67   :  { %1991 = vmatpush1.bf16.msra.mxu0 %v2638_v4 }
  0x68   :  { %2017 = vmatprep.subr.bf16.mxu0 %v2576_v5  ;;  %2012 = vmatpush3.bf16.msra.mxu1 %v2649_v12 }
  0x69   :  { %2013 = vmatprep.subr.bf16.mxu1 %v2516_v0 }
  0x6c   :  { %2015 = vmatpush3.bf16.msra.mxu1 %v2655_v17 }
  0x6d   :  { %2048 = vmatprep.subr.bf16.mxu1 %v2516_v0 }
 0x11d   :  { %v169_v19 = vpop.f32.mrb[0].mxu0 }
 0x11e   :  { %v244_v20 = vadd.f32 %v169_v19, %v102_v18  ;;  %v171_v22 = vpop.f32.mrb[1].mxu0  ;;  %v432_v18 = vrot.slane %v271_v55, 4 }
 0x11f   :  { %v254_v27 = vadd.f32 %v252_v25, %v171_v22 }
 0x120   :  { %v1472_v24 = vmul.f32 -1.442695, %v244_v20 }
 0x121   :  { %v1473_v30 = vmul.f32 -1.442695, %v254_v27 }
 0x122   :  { %2360 = vpow2.f32 %v1472_v24  ;;  %v240_v26 = vpop.f32.mrb[0].mxu1 }
 0x123   :  { %v1658_v28 = vpop.f32.mrb[1].mxu1  ;;  %2362 = vpow2.f32 %v1473_v30  ;;  %v261_v37 = vadd.f32 %v2699_v36, %v240_v26 }
 0x12c   :  { %v2361_v31 = vpop.eup %2360 }
 0x12d   :  { %v248_v33 = vadd.f32 1.0, %v2361_v31  ;;  %v2363_v38 = vpop.eup %2362 }
 0x12e   :  { %v258_v45 = vadd.f32 1.0, %v2363_v38 }
 0x12f   :  { %2364 = vrcp.f32 %v248_v33  ;;  %v440_v33 = vld [vmem:[#allocation3 + $0xc] sm:$0x3f] }
 0x139   :  { %v2365_v40 = vpop.eup %2364 }
 0x13a   :  { %v262_v42 = vmul.f32 %v2365_v40, %v261_v37 }
 0x13c   :  { %v265_v46 = vadd.f32 %v263_v39, %v262_v42 }
 0x13e   :  { %2366 = vtanh.f32 %v265_v46  ;;  %v590_v46 = vrot.slane %v440_v33, 2 }
 0x13f   :  { %2368 = vrcp.f32 %v258_v45 }
 0x148   :  { %v2367_v47 = vpop.eup %2366 }
 0x149   :  { %v267_v48 = vsub.f32 %v2646_v11, %v2367_v47  ;;  %v2369_v49 = vpop.eup %2368 }
 0x14b   :  { %v268_v51 = vmul.f32 %v2369_v49, %v267_v48 }
 0x14d   :  { %v2703_v54 = vadd.f32 %v2367_v47, %v268_v51 }
 0x14f   :  { %270 = vst [vmem:[#allocation8] sm:$0x3] %v2703_v54  ;;  %337 = vmatmul.mubr.f32.vlgmr.msra.gmra.mrb[2].mxu0 %v2703_v54  ;;  %1692 = vmatmul.mubr.f32.vlgmr.msra.gmra.mrb[2].mxu1 %v2703_v54 }
 0x150   :  { %2019 = vmatpush1.bf16.msra.mxu0 %v2578_v9  ;;  %2050 = vmatpush3.bf16.msra.mxu1 %v2595_v29 }
 0x151   :  { %2021 = vmatprep.subr.bf16.mxu0 %v2580_v10  ;;  %2051 = vmatprep.subr.bf16.mxu1 %v2516_v0 }
 0x152   :  { %505 = vmatprep.mubr.f32.mxu0 %v2517_v1  ;;  %1726 = vmatprep.mubr.msk.f32.mxu1 %vm2518_vm0, %v2517_v1 }
 0x154   :  { %2023 = vmatpush1.bf16.msra.mxu0 %v2584_v15  ;;  %2053 = vmatpush3.bf16.msra.mxu1 %v2601_v34 }
 0x155   :  { %2025 = vmatprep.subr.bf16.mxu0 %v2587_v16  ;;  %2054 = vmatprep.subr.bf16.mxu1 %v2516_v0 }
 0x158   :  { %2027 = vmatpush1.bf16.msra.mxu0 %v2590_v21  ;;  %2056 = vmatpush3.bf16.msra.mxu1 %v2611_v43 }
 0x159   :  { %2029 = vmatprep.subr.bf16.mxu0 %v2593_v23  ;;  %2057 = vmatprep.subr.bf16.mxu1 %v2516_v0 }
 0x15c   :  { %2031 = vmatpush1.bf16.msra.mxu0 %v2598_v32  ;;  %2059 = vmatpush3.bf16.msra.mxu1 %v2621_v52 }
 0x15d   :  { %2033 = vmatprep.subr.bf16.mxu0 %v2604_v35  ;;  %2060 = vmatprep.subr.bf16.mxu1 %v2516_v0 }
 0x160   :  { %2035 = vmatpush1.bf16.msra.mxu0 %v2608_v41  ;;  %2062 = vmatpush3.bf16.msra.mxu1 %v2631_v61 }
 0x161   :  { %2037 = vmatprep.subr.bf16.mxu0 %v2614_v44  ;;  %2063 = vmatprep.subr.bf16.mxu1 %v2516_v0 }
 0x164   :  { %2039 = vmatpush1.bf16.msra.mxu0 %v2618_v50  ;;  %2065 = vmatpush3.bf16.msra.mxu1 %v2641_v6 }
 0x165   :  { %2041 = vmatprep.subr.bf16.mxu0 %v2624_v53  ;;  %2066 = vmatprep.subr.bf16.mxu1 %v2516_v0 }
 0x168   :  { %2043 = vmatpush1.bf16.msra.mxu0 %v2628_v59  ;;  %2068 = vmatpush3.bf16.msra.mxu1 %v2649_v12 }
 0x169   :  { %2045 = vmatprep.subr.bf16.mxu0 %v2634_v62  ;;  %2069 = vmatprep.subr.bf16.mxu1 %v2516_v0 }
 0x16c   :  { %2047 = vmatpush1.bf16.msra.mxu0 %v2638_v4  ;;  %2071 = vmatpush3.bf16.msra.mxu1 %v2655_v17 }
 0x16d   :  { %2073 = vmatprep.subr.bf16.mxu0 %v2576_v5  ;;  %2104 = vmatprep.subr.bf16.mxu1 %v2516_v0 }
 0x222   :  { %v338_v56 = vpop.f32.mrb[2].mxu0  ;;  %v409_v57 = vpop.f32.mrb[2].mxu1 }
 0x223   :  { %v413_v58 = vadd.f32 %v338_v56, %v271_v55  ;;  %v340_v60 = vpop.f32.mrb[3].mxu0  ;;  %v1693_v63 = vpop.f32.mrb[3].mxu1  ;;  %v430_v19 = vadd.f32 %v2699_v36, %v409_v57  ;;  %v601_v55 = vrot.slane %v440_v33, 4 }
 0x224   :  { %v423_v7 = vadd.f32 %v421_v3, %v340_v60 }
 0x225   :  { %v1474_v2 = vmul.f32 -1.442695, %v413_v58 }
 0x226   :  { %v1475_v8 = vmul.f32 -1.442695, %v423_v7 }
 0x227   :  { %2370 = vpow2.f32 %v1474_v2 }
 0x228   :  { %2372 = vpow2.f32 %v1475_v8 }
 0x231   :  { %v2371_v11 = vpop.eup %2370 }
 0x232   :  { %v417_v13 = vadd.f32 1.0, %v2371_v11  ;;  %v2373_v14 = vpop.eup %2372 }
 0x233   :  { %v427_v25 = vadd.f32 1.0, %v2373_v14 }
 0x234   :  { %2374 = vrcp.f32 %v417_v13  ;;  %v609_v13 = vld [vmem:[#allocation3 + $0x12] sm:$0x3f] }
 0x23e   :  { %v2375_v20 = vpop.eup %2374 }
 0x23f   :  { %v431_v22 = vmul.f32 %v2375_v20, %v430_v19 }
 0x241   :  { %v434_v24 = vadd.f32 %v432_v18, %v431_v22 }
 0x243   :  { %2376 = vtanh.f32 %v434_v24 }
 0x244   :  { %2378 = vrcp.f32 %v427_v25  ;;  %v759_v25 = vrot.slane %v609_v13, 2 }
 0x24d   :  { %v2377_v26 = vpop.eup %2376 }
 0x24e   :  { %v436_v27 = vsub.f32 %v2703_v54, %v2377_v26  ;;  %v2379_v28 = vpop.eup %2378 }
 0x250   :  { %v437_v30 = vmul.f32 %v2379_v28, %v436_v27 }
 0x252   :  { %v2745_v31 = vadd.f32 %v2377_v26, %v437_v30 }
 0x254   :  { %439 = vst [vmem:[#allocation8 + $0x2] sm:$0x3] %v2745_v31  ;;  %506 = vmatmul.mubr.f32.vlgmr.msra.gmra.mrb[4].mxu0 %v2745_v31  ;;  %1727 = vmatmul.mubr.f32.vlgmr.msra.gmra.mrb[4].mxu1 %v2745_v31 }
 0x255   :  { %2075 = vmatpush1.bf16.msra.mxu0 %v2578_v9  ;;  %2106 = vmatpush3.bf16.msra.mxu1 %v2595_v29 }
 0x256   :  { %2077 = vmatprep.subr.bf16.mxu0 %v2580_v10  ;;  %2107 = vmatprep.subr.bf16.mxu1 %v2516_v0 }
 0x257   :  { %674 = vmatprep.mubr.f32.mxu0 %v2517_v1  ;;  %1761 = vmatprep.mubr.msk.f32.mxu1 %vm2518_vm0, %v2517_v1 }
 0x259   :  { %2079 = vmatpush1.bf16.msra.mxu0 %v2584_v15  ;;  %2109 = vmatpush3.bf16.msra.mxu1 %v2601_v34 }
 0x25a   :  { %2081 = vmatprep.subr.bf16.mxu0 %v2587_v16  ;;  %2110 = vmatprep.subr.bf16.mxu1 %v2516_v0 }
 0x25d   :  { %2083 = vmatpush1.bf16.msra.mxu0 %v2590_v21  ;;  %2112 = vmatpush3.bf16.msra.mxu1 %v2611_v43 }
 0x25e   :  { %2085 = vmatprep.subr.bf16.mxu0 %v2593_v23  ;;  %2113 = vmatprep.subr.bf16.mxu1 %v2516_v0 }
 0x261   :  { %2087 = vmatpush1.bf16.msra.mxu0 %v2598_v32  ;;  %2115 = vmatpush3.bf16.msra.mxu1 %v2621_v52 }
 0x262   :  { %2089 = vmatprep.subr.bf16.mxu0 %v2604_v35  ;;  %2116 = vmatprep.subr.bf16.mxu1 %v2516_v0 }
 0x265   :  { %2091 = vmatpush1.bf16.msra.mxu0 %v2608_v41  ;;  %2118 = vmatpush3.bf16.msra.mxu1 %v2631_v61 }
 0x266   :  { %2093 = vmatprep.subr.bf16.mxu0 %v2614_v44  ;;  %2119 = vmatprep.subr.bf16.mxu1 %v2516_v0 }
 0x269   :  { %2095 = vmatpush1.bf16.msra.mxu0 %v2618_v50  ;;  %2121 = vmatpush3.bf16.msra.mxu1 %v2641_v6 }
 0x26a   :  { %2097 = vmatprep.subr.bf16.mxu0 %v2624_v53  ;;  %2122 = vmatprep.subr.bf16.mxu1 %v2516_v0 }
 0x26d   :  { %2099 = vmatpush1.bf16.msra.mxu0 %v2628_v59  ;;  %2124 = vmatpush3.bf16.msra.mxu1 %v2649_v12 }
 0x26e   :  { %2101 = vmatprep.subr.bf16.mxu0 %v2634_v62  ;;  %2125 = vmatprep.subr.bf16.mxu1 %v2516_v0 }
 0x271   :  { %2103 = vmatpush1.bf16.msra.mxu0 %v2638_v4  ;;  %2127 = vmatpush3.bf16.msra.mxu1 %v2655_v17 }
 0x272   :  { %2129 = vmatprep.subr.bf16.mxu0 %v2576_v5  ;;  %2160 = vmatprep.subr.bf16.mxu1 %v2516_v0 }
 0x327   :  { %v507_v37 = vpop.f32.mrb[4].mxu0  ;;  %v578_v38 = vpop.f32.mrb[4].mxu1 }
 0x328   :  { %v582_v39 = vadd.f32 %v507_v37, %v440_v33  ;;  %v509_v40 = vpop.f32.mrb[5].mxu0  ;;  %v1728_v42 = vpop.f32.mrb[5].mxu1  ;;  %v599_v56 = vadd.f32 %v2699_v36, %v578_v38  ;;  %v770_v33 = vrot.slane %v609_v13, 4 }
 0x329   :  { %v592_v47 = vadd.f32 %v590_v46, %v509_v40 }
 0x32a   :  { %v1476_v45 = vmul.f32 -1.442695, %v582_v39 }
 0x32b   :  { %v1477_v48 = vmul.f32 -1.442695, %v592_v47 }
 0x32c   :  { %2380 = vpow2.f32 %v1476_v45 }
 0x32d   :  { %2382 = vpow2.f32 %v1477_v48 }
 0x336   :  { %v2381_v49 = vpop.eup %2380 }
 0x337   :  { %v586_v51 = vadd.f32 1.0, %v2381_v49  ;;  %v2383_v54 = vpop.eup %2382 }
 0x338   :  { %v596_v63 = vadd.f32 1.0, %v2383_v54 }
 0x339   :  { %2384 = vrcp.f32 %v586_v51  ;;  %v778_v51 = vld [vmem:[#allocation3 + $0x18] sm:$0x3f] }
 0x343   :  { %v2385_v57 = vpop.eup %2384 }
 0x344   :  { %v600_v58 = vmul.f32 %v2385_v57, %v599_v56 }
 0x346   :  { %v603_v60 = vadd.f32 %v601_v55, %v600_v58 }
 0x348   :  { %2386 = vtanh.f32 %v603_v60 }
 0x349   :  { %2388 = vrcp.f32 %v596_v63  ;;  %v928_v63 = vrot.slane %v778_v51, 2 }
 0x352   :  { %v2387_v2 = vpop.eup %2386 }
 0x353   :  { %v605_v3 = vsub.f32 %v2745_v31, %v2387_v2  ;;  %v2389_v7 = vpop.eup %2388 }
 0x355   :  { %v606_v8 = vmul.f32 %v2389_v7, %v605_v3 }
 0x357   :  { %v2787_v11 = vadd.f32 %v2387_v2, %v606_v8 }
 0x359   :  { %608 = vst [vmem:[#allocation8 + $0x4] sm:$0x3] %v2787_v11  ;;  %675 = vmatmul.mubr.f32.vlgmr.msra.gmra.mrb[6].mxu0 %v2787_v11  ;;  %1762 = vmatmul.mubr.f32.vlgmr.msra.gmra.mrb[6].mxu1 %v2787_v11 }
 0x35a   :  { %2131 = vmatpush1.bf16.msra.mxu0 %v2578_v9  ;;  %2162 = vmatpush3.bf16.msra.mxu1 %v2595_v29 }
 0x35b   :  { %2133 = vmatprep.subr.bf16.mxu0 %v2580_v10  ;;  %2163 = vmatprep.subr.bf16.mxu1 %v2516_v0 }
 0x35c   :  { %843 = vmatprep.mubr.f32.mxu0 %v2517_v1  ;;  %1796 = vmatprep.mubr.msk.f32.mxu1 %vm2518_vm0, %v2517_v1 }
 0x35e   :  { %2135 = vmatpush1.bf16.msra.mxu0 %v2584_v15  ;;  %2165 = vmatpush3.bf16.msra.mxu1 %v2601_v34 }
 0x35f   :  { %2137 = vmatprep.subr.bf16.mxu0 %v2587_v16  ;;  %2166 = vmatprep.subr.bf16.mxu1 %v2516_v0 }
 0x362   :  { %2139 = vmatpush1.bf16.msra.mxu0 %v2590_v21  ;;  %2168 = vmatpush3.bf16.msra.mxu1 %v2611_v43 }
 0x363   :  { %2141 = vmatprep.subr.bf16.mxu0 %v2593_v23  ;;  %2169 = vmatprep.subr.bf16.mxu1 %v2516_v0 }
 0x366   :  { %2143 = vmatpush1.bf16.msra.mxu0 %v2598_v32  ;;  %2171 = vmatpush3.bf16.msra.mxu1 %v2621_v52 }
 0x367   :  { %2145 = vmatprep.subr.bf16.mxu0 %v2604_v35  ;;  %2172 = vmatprep.subr.bf16.mxu1 %v2516_v0 }
 0x36a   :  { %2147 = vmatpush1.bf16.msra.mxu0 %v2608_v41  ;;  %2174 = vmatpush3.bf16.msra.mxu1 %v2631_v61 }
 0x36b   :  { %2149 = vmatprep.subr.bf16.mxu0 %v2614_v44  ;;  %2175 = vmatprep.subr.bf16.mxu1 %v2516_v0 }
 0x36e   :  { %2151 = vmatpush1.bf16.msra.mxu0 %v2618_v50  ;;  %2177 = vmatpush3.bf16.msra.mxu1 %v2641_v6 }
 0x36f   :  { %2153 = vmatprep.subr.bf16.mxu0 %v2624_v53  ;;  %2178 = vmatprep.subr.bf16.mxu1 %v2516_v0 }
 0x372   :  { %2155 = vmatpush1.bf16.msra.mxu0 %v2628_v59  ;;  %2180 = vmatpush3.bf16.msra.mxu1 %v2649_v12 }
 0x373   :  { %2157 = vmatprep.subr.bf16.mxu0 %v2634_v62  ;;  %2181 = vmatprep.subr.bf16.mxu1 %v2516_v0 }
 0x376   :  { %2159 = vmatpush1.bf16.msra.mxu0 %v2638_v4  ;;  %2183 = vmatpush3.bf16.msra.mxu1 %v2655_v17 }
 0x377   :  { %2185 = vmatprep.subr.bf16.mxu0 %v2576_v5  ;;  %2216 = vmatprep.subr.bf16.mxu1 %v2516_v0 }
 0x42c   :  { %v676_v14 = vpop.f32.mrb[6].mxu0  ;;  %v747_v18 = vpop.f32.mrb[6].mxu1 }
 0x42d   :  { %v751_v19 = vadd.f32 %v676_v14, %v609_v13  ;;  %v678_v20 = vpop.f32.mrb[7].mxu0  ;;  %v1763_v22 = vpop.f32.mrb[7].mxu1  ;;  %v768_v37 = vadd.f32 %v2699_v36, %v747_v18  ;;  %v939_v13 = vrot.slane %v778_v51, 4 }
 0x42e   :  { %v761_v26 = vadd.f32 %v759_v25, %v678_v20 }
 0x42f   :  { %v1478_v24 = vmul.f32 -1.442695, %v751_v19 }
 0x430   :  { %v1479_v27 = vmul.f32 -1.442695, %v761_v26 }
 0x431   :  { %2390 = vpow2.f32 %v1478_v24 }
 0x432   :  { %2392 = vpow2.f32 %v1479_v27 }
 0x43b   :  { %v2391_v28 = vpop.eup %2390 }
 0x43c   :  { %v755_v30 = vadd.f32 1.0, %v2391_v28  ;;  %v2393_v31 = vpop.eup %2392 }
 0x43d   :  { %v765_v42 = vadd.f32 1.0, %v2393_v31 }
 0x43e   :  { %2394 = vrcp.f32 %v755_v30  ;;  %v947_v30 = vld [vmem:[#allocation3 + $0x1e] sm:$0x3f] }
 0x448   :  { %v2395_v38 = vpop.eup %2394 }
 0x449   :  { %v769_v39 = vmul.f32 %v2395_v38, %v768_v37 }
 0x44b   :  { %v772_v40 = vadd.f32 %v770_v33, %v769_v39 }
 0x44d   :  { %2396 = vtanh.f32 %v772_v40 }
 0x44e   :  { %2398 = vrcp.f32 %v765_v42  ;;  %v1097_v42 = vrot.slane %v947_v30, 2 }
 0x457   :  { %v2397_v45 = vpop.eup %2396 }
 0x458   :  { %v774_v46 = vsub.f32 %v2787_v11, %v2397_v45  ;;  %v2399_v47 = vpop.eup %2398 }
 0x45a   :  { %v775_v48 = vmul.f32 %v2399_v47, %v774_v46 }
 0x45c   :  { %v2829_v49 = vadd.f32 %v2397_v45, %v775_v48 }
 0x45e   :  { %777 = vst [vmem:[#allocation8 + $0x6] sm:$0x3] %v2829_v49  ;;  %844 = vmatmul.mubr.f32.vlgmr.msra.gmra.mrb[8].mxu0 %v2829_v49  ;;  %1797 = vmatmul.mubr.f32.vlgmr.msra.gmra.mrb[8].mxu1 %v2829_v49 }
 0x45f   :  { %2187 = vmatpush1.bf16.msra.mxu0 %v2578_v9  ;;  %2218 = vmatpush3.bf16.msra.mxu1 %v2595_v29 }
 0x460   :  { %2189 = vmatprep.subr.bf16.mxu0 %v2580_v10  ;;  %2219 = vmatprep.subr.bf16.mxu1 %v2516_v0 }
 0x461   :  { %1012 = vmatprep.mubr.f32.mxu0 %v2517_v1  ;;  %1831 = vmatprep.mubr.msk.f32.mxu1 %vm2518_vm0, %v2517_v1 }
 0x463   :  { %2191 = vmatpush1.bf16.msra.mxu0 %v2584_v15  ;;  %2221 = vmatpush3.bf16.msra.mxu1 %v2601_v34 }
 0x464   :  { %2193 = vmatprep.subr.bf16.mxu0 %v2587_v16  ;;  %2222 = vmatprep.subr.bf16.mxu1 %v2516_v0 }
 0x467   :  { %2195 = vmatpush1.bf16.msra.mxu0 %v2590_v21  ;;  %2224 = vmatpush3.bf16.msra.mxu1 %v2611_v43 }
 0x468   :  { %2197 = vmatprep.subr.bf16.mxu0 %v2593_v23  ;;  %2225 = vmatprep.subr.bf16.mxu1 %v2516_v0 }
 0x46b   :  { %2199 = vmatpush1.bf16.msra.mxu0 %v2598_v32  ;;  %2227 = vmatpush3.bf16.msra.mxu1 %v2621_v52 }
 0x46c   :  { %2201 = vmatprep.subr.bf16.mxu0 %v2604_v35  ;;  %2228 = vmatprep.subr.bf16.mxu1 %v2516_v0 }
 0x46f   :  { %2203 = vmatpush1.bf16.msra.mxu0 %v2608_v41  ;;  %2230 = vmatpush3.bf16.msra.mxu1 %v2631_v61 }
 0x470   :  { %2205 = vmatprep.subr.bf16.mxu0 %v2614_v44  ;;  %2231 = vmatprep.subr.bf16.mxu1 %v2516_v0 }
 0x473   :  { %2207 = vmatpush1.bf16.msra.mxu0 %v2618_v50  ;;  %2233 = vmatpush3.bf16.msra.mxu1 %v2641_v6 }
 0x474   :  { %2209 = vmatprep.subr.bf16.mxu0 %v2624_v53  ;;  %2234 = vmatprep.subr.bf16.mxu1 %v2516_v0 }
 0x477   :  { %2211 = vmatpush1.bf16.msra.mxu0 %v2628_v59  ;;  %2236 = vmatpush3.bf16.msra.mxu1 %v2649_v12 }
 0x478   :  { %2213 = vmatprep.subr.bf16.mxu0 %v2634_v62  ;;  %2237 = vmatprep.subr.bf16.mxu1 %v2516_v0 }
 0x47b   :  { %2215 = vmatpush1.bf16.msra.mxu0 %v2638_v4  ;;  %2239 = vmatpush3.bf16.msra.mxu1 %v2655_v17 }
 0x47c   :  { %2241 = vmatprep.subr.bf16.mxu0 %v2576_v5  ;;  %2272 = vmatprep.subr.bf16.mxu1 %v2516_v0 }
 0x531   :  { %v845_v54 = vpop.f32.mrb[8].mxu0  ;;  %v916_v55 = vpop.f32.mrb[8].mxu1 }
 0x532   :  { %v920_v56 = vadd.f32 %v845_v54, %v778_v51  ;;  %v847_v57 = vpop.f32.mrb[9].mxu0  ;;  %v1798_v58 = vpop.f32.mrb[9].mxu1  ;;  %v937_v14 = vadd.f32 %v2699_v36, %v916_v55  ;;  %v1108_v51 = vrot.slane %v947_v30, 4 }
 0x533   :  { %v930_v2 = vadd.f32 %v928_v63, %v847_v57 }
 0x534   :  { %v1480_v60 = vmul.f32 -1.442695, %v920_v56 }
 0x535   :  { %v1481_v3 = vmul.f32 -1.442695, %v930_v2 }
 0x536   :  { %2400 = vpow2.f32 %v1480_v60 }
 0x537   :  { %2402 = vpow2.f32 %v1481_v3 }
 0x540   :  { %v2401_v7 = vpop.eup %2400 }
 0x541   :  { %v924_v8 = vadd.f32 1.0, %v2401_v7  ;;  %v2403_v11 = vpop.eup %2402 }
 0x542   :  { %v934_v22 = vadd.f32 1.0, %v2403_v11 }
 0x543   :  { %2404 = vrcp.f32 %v924_v8 }
 0x54d   :  { %v2405_v18 = vpop.eup %2404 }
 0x54e   :  { %v938_v19 = vmul.f32 %v2405_v18, %v937_v14 }
 0x550   :  { %v941_v20 = vadd.f32 %v939_v13, %v938_v19 }
 0x552   :  { %2406 = vtanh.f32 %v941_v20 }
 0x553   :  { %2408 = vrcp.f32 %v934_v22 }
 0x55c   :  { %v2407_v24 = vpop.eup %2406 }
 0x55d   :  { %v943_v25 = vsub.f32 %v2829_v49, %v2407_v24  ;;  %v2409_v26 = vpop.eup %2408 }
 0x55f   :  { %v944_v27 = vmul.f32 %v2409_v26, %v943_v25 }
 0x561   :  { %v2871_v28 = vadd.f32 %v2407_v24, %v944_v27 }
 0x563   :  { %946 = vst [vmem:[#allocation8 + $0x8] sm:$0x3] %v2871_v28  ;;  %1013 = vmatmul.mubr.f32.vlgmr.msra.gmra.mrb[10].mxu0 %v2871_v28  ;;  %1832 = vmatmul.mubr.f32.vlgmr.msra.gmra.mrb[10].mxu1 %v2871_v28 }
 0x564   :  { %2243 = vmatpush1.bf16.msra.mxu0 %v2578_v9  ;;  %2274 = vmatpush3.bf16.msra.mxu1 %v2595_v29 }
 0x565   :  { %2245 = vmatprep.subr.bf16.mxu0 %v2580_v10  ;;  %2275 = vmatprep.subr.bf16.mxu1 %v2516_v0 }
 0x566   :  { %1181 = vmatprep.mubr.f32.mxu0 %v2517_v1  ;;  %1866 = vmatprep.mubr.msk.f32.mxu1 %vm2518_vm0, %v2517_v1 }
 0x568   :  { %2247 = vmatpush1.bf16.msra.mxu0 %v2584_v15  ;;  %2277 = vmatpush3.bf16.msra.mxu1 %v2601_v34 }
 0x569   :  { %2249 = vmatprep.subr.bf16.mxu0 %v2587_v16  ;;  %2278 = vmatprep.subr.bf16.mxu1 %v2516_v0 }
 0x56c   :  { %2251 = vmatpush1.bf16.msra.mxu0 %v2590_v21  ;;  %2280 = vmatpush3.bf16.msra.mxu1 %v2611_v43 }
 0x56d   :  { %2253 = vmatprep.subr.bf16.mxu0 %v2593_v23  ;;  %2281 = vmatprep.subr.bf16.mxu1 %v2516_v0 }
 0x570   :  { %2255 = vmatpush1.bf16.msra.mxu0 %v2598_v32  ;;  %2283 = vmatpush3.bf16.msra.mxu1 %v2621_v52 }
 0x571   :  { %2257 = vmatprep.subr.bf16.mxu0 %v2604_v35  ;;  %2284 = vmatprep.subr.bf16.mxu1 %v2516_v0 }
 0x574   :  { %2259 = vmatpush1.bf16.msra.mxu0 %v2608_v41  ;;  %2286 = vmatpush3.bf16.msra.mxu1 %v2631_v61 }
 0x575   :  { %2261 = vmatprep.subr.bf16.mxu0 %v2614_v44  ;;  %2287 = vmatprep.subr.bf16.mxu1 %v2516_v0 }
 0x578   :  { %2263 = vmatpush1.bf16.msra.mxu0 %v2618_v50  ;;  %2289 = vmatpush3.bf16.msra.mxu1 %v2641_v6 }
 0x579   :  { %2265 = vmatprep.subr.bf16.mxu0 %v2624_v53  ;;  %2290 = vmatprep.subr.bf16.mxu1 %v2516_v0 }
 0x57c   :  { %2267 = vmatpush1.bf16.msra.mxu0 %v2628_v59  ;;  %2292 = vmatpush3.bf16.msra.mxu1 %v2649_v12 }
 0x57d   :  { %2269 = vmatprep.subr.bf16.mxu0 %v2634_v62  ;;  %2293 = vmatprep.subr.bf16.mxu1 %v2516_v0 }
 0x580   :  { %2271 = vmatpush1.bf16.msra.mxu0 %v2638_v4  ;;  %2295 = vmatpush3.bf16.msra.mxu1 %v2655_v17 }
 0x581   :  { %2297 = vmatprep.subr.bf16.mxu0 %v2576_v5  ;;  %2328 = vmatprep.subr.bf16.mxu1 %v2516_v0 }
 0x636   :  { %v1014_v31 = vpop.f32.mrb[10].mxu0  ;;  %v1085_v33 = vpop.f32.mrb[10].mxu1 }
 0x637   :  { %v1089_v37 = vadd.f32 %v1014_v31, %v947_v30  ;;  %v1016_v38 = vpop.f32.mrb[11].mxu0  ;;  %v1833_v39 = vpop.f32.mrb[11].mxu1  ;;  %v1106_v5 = vadd.f32 %v2699_v36, %v1085_v33 }
 0x638   :  { %v1099_v45 = vadd.f32 %v1097_v42, %v1016_v38 }
 0x639   :  { %v1482_v40 = vmul.f32 -1.442695, %v1089_v37 }
 0x63a   :  { %v1483_v46 = vmul.f32 -1.442695, %v1099_v45 }
 0x63b   :  { %2410 = vpow2.f32 %v1482_v40 }
 0x63c   :  { %2412 = vpow2.f32 %v1483_v46 }
 0x645   :  { %v2411_v47 = vpop.eup %2410 }
 0x646   :  { %v1093_v48 = vadd.f32 1.0, %v2411_v47  ;;  %v2413_v49 = vpop.eup %2412 }
 0x647   :  { %v1103_v57 = vadd.f32 1.0, %v2413_v49 }
 0x648   :  { %2414 = vrcp.f32 %v1093_v48 }
 0x652   :  { %v2415_v54 = vpop.eup %2414 }
 0x653   :  { %v1107_v55 = vmul.f32 %v2415_v54, %v1106_v5 }
 0x655   :  { %v1110_v56 = vadd.f32 %v1108_v51, %v1107_v55 }
 0x657   :  { %2416 = vtanh.f32 %v1110_v56 }
 0x658   :  { %2418 = vrcp.f32 %v1103_v57 }
 0x661   :  { %v2417_v58 = vpop.eup %2416 }
 0x662   :  { %v1112_v60 = vsub.f32 %v2871_v28, %v2417_v58  ;;  %v2419_v63 = vpop.eup %2418 }
 0x664   :  { %v1113_v2 = vmul.f32 %v2419_v63, %v1112_v60 }
 0x666   :  { %v2913_v3 = vadd.f32 %v2417_v58, %v1113_v2 }
 0x668   :  { %1115 = vst [vmem:[#allocation8 + $0xa] sm:$0x3] %v2913_v3  ;;  %1182 = vmatmul.mubr.f32.vlgmr.msra.gmra.mrb[12].mxu0 %v2913_v3  ;;  %1867 = vmatmul.mubr.f32.vlgmr.msra.gmra.mrb[12].mxu1 %v2913_v3 }
 0x669   :  { %2299 = vmatpush1.bf16.msra.mxu0 %v2578_v9  ;;  %2330 = vmatpush3.bf16.msra.mxu1 %v2595_v29 }
 0x66a   :  { %2301 = vmatprep.subr.bf16.mxu0 %v2580_v10  ;;  %2331 = vmatprep.subr.bf16.mxu1 %v2516_v0 }
 0x66b   :  { %1350 = vmatprep.mubr.f32.mxu0 %v2517_v1  ;;  %1901 = vmatprep.mubr.msk.f32.mxu1 %vm2518_vm0, %v2517_v1  ;;  %v1116_v1 = vld [vmem:[#allocation3 + $0x24] sm:$0x3f] }
 0x66c   :  { %v1266_v29 = vrot.slane %v1116_v1, 2 }
 0x66d   :  { %2303 = vmatpush1.bf16.msra.mxu0 %v2584_v15  ;;  %2333 = vmatpush3.bf16.msra.mxu1 %v2601_v34 }
 0x66e   :  { %2305 = vmatprep.subr.bf16.mxu0 %v2587_v16  ;;  %2334 = vmatprep.subr.bf16.mxu1 %v2516_v0 }
 0x671   :  { %2307 = vmatpush1.bf16.msra.mxu0 %v2590_v21  ;;  %2336 = vmatpush3.bf16.msra.mxu1 %v2611_v43  ;;  %v1277_v43 = vrot.slane %v1116_v1, 4 }
 0x672   :  { %2309 = vmatprep.subr.bf16.mxu0 %v2593_v23  ;;  %2337 = vmatprep.subr.bf16.mxu1 %v2516_v0 }
 0x675   :  { %2311 = vmatpush1.bf16.msra.mxu0 %v2598_v32  ;;  %2339 = vmatpush3.bf16.msra.mxu1 %v2621_v52 }
 0x676   :  { %2313 = vmatprep.subr.bf16.mxu0 %v2604_v35  ;;  %2340 = vmatprep.subr.bf16.mxu1 %v2516_v0 }
 0x679   :  { %2315 = vmatpush1.bf16.msra.mxu0 %v2608_v41  ;;  %2342 = vmatpush3.bf16.msra.mxu1 %v2631_v61 }
 0x67a   :  { %2317 = vmatprep.subr.bf16.mxu0 %v2614_v44  ;;  %2343 = vmatprep.subr.bf16.mxu1 %v2516_v0 }
 0x67d   :  { %2319 = vmatpush1.bf16.msra.mxu0 %v2618_v50  ;;  %2345 = vmatpush3.bf16.msra.mxu1 %v2641_v6 }
 0x67e   :  { %2321 = vmatprep.subr.bf16.mxu0 %v2624_v53  ;;  %2346 = vmatprep.subr.bf16.mxu1 %v2516_v0 }
 0x681   :  { %2323 = vmatpush1.bf16.msra.mxu0 %v2628_v59  ;;  %2348 = vmatpush3.bf16.msra.mxu1 %v2649_v12 }
 0x682   :  { %2325 = vmatprep.subr.bf16.mxu0 %v2634_v62  ;;  %2349 = vmatprep.subr.bf16.mxu1 %v2516_v0 }
 0x685   :  { %2327 = vmatpush1.bf16.msra.mxu0 %v2638_v4  ;;  %2351 = vmatpush3.bf16.msra.mxu1 %v2655_v17  ;;  %v1285_v17 = vld [vmem:[#allocation3 + $0x2a] sm:$0x3f] }
 0x686   :  { %v1435_v19 = vrot.slane %v1285_v17, 2  ;;  %v1446_v27 = vrot.slane %v1285_v17, 4 }
 0x73b   :  { %v1183_v9 = vpop.f32.mrb[12].mxu0  ;;  %v1254_v10 = vpop.f32.mrb[12].mxu1 }
 0x73c   :  { %v1258_v15 = vadd.f32 %v1183_v9, %v1116_v1  ;;  %v1185_v16 = vpop.f32.mrb[13].mxu0  ;;  %v1868_v21 = vpop.f32.mrb[13].mxu1  ;;  %v1275_v44 = vadd.f32 %v2699_v36, %v1254_v10 }
 0x73d   :  { %v1268_v32 = vadd.f32 %v1266_v29, %v1185_v16 }
 0x73e   :  { %v1484_v23 = vmul.f32 -1.442695, %v1258_v15 }
 0x73f   :  { %v1485_v34 = vmul.f32 -1.442695, %v1268_v32 }
 0x740   :  { %2420 = vpow2.f32 %v1484_v23 }
 0x741   :  { %2422 = vpow2.f32 %v1485_v34 }
 0x74a   :  { %v2421_v35 = vpop.eup %2420 }
 0x74b   :  { %v1262_v41 = vadd.f32 1.0, %v2421_v35  ;;  %v2423_v0 = vpop.eup %2422 }
 0x74c   :  { %v1272_v59 = vadd.f32 1.0, %v2423_v0 }
 0x74d   :  { %2424 = vrcp.f32 %v1262_v41 }
 0x757   :  { %v2425_v50 = vpop.eup %2424 }
 0x758   :  { %v1276_v52 = vmul.f32 %v2425_v50, %v1275_v44 }
 0x75a   :  { %v1279_v53 = vadd.f32 %v1277_v43, %v1276_v52 }
 0x75c   :  { %2426 = vtanh.f32 %v1279_v53 }
 0x75d   :  { %2428 = vrcp.f32 %v1272_v59 }
 0x766   :  { %v2427_v61 = vpop.eup %2426 }
 0x767   :  { %v1281_v62 = vsub.f32 %v2913_v3, %v2427_v61  ;;  %v2429_v4 = vpop.eup %2428 }
 0x769   :  { %v1282_v6 = vmul.f32 %v2429_v4, %v1281_v62 }
 0x76b   :  { %v1283_v12 = vadd.f32 %v2427_v61, %v1282_v6 }
 0x76d   :  { %1284 = vst [vmem:[#allocation8 + $0xc] sm:$0x3] %v1283_v12  ;;  %1351 = vmatmul.mubr.f32.vlgmr.msra.gmra.mrb[14].mxu0 %v1283_v12  ;;  %1902 = vmatmul.mubr.f32.vlgmr.msra.gmra.mrb[14].mxu1 %v1283_v12 }
 0x840   :  { %v1352_v7 = vpop.f32.mrb[14].mxu0  ;;  %v1423_v8 = vpop.f32.mrb[14].mxu1 }
 0x841   :  { %v1427_v11 = vadd.f32 %v1352_v7, %v1285_v17  ;;  %v1354_v13 = vpop.f32.mrb[15].mxu0  ;;  %v1903_v14 = vpop.f32.mrb[15].mxu1  ;;  %v1444_v28 = vadd.f32 %v2699_v36, %v1423_v8 }
 0x842   :  { %v1437_v20 = vadd.f32 %v1435_v19, %v1354_v13 }
 0x843   :  { %v1486_v18 = vmul.f32 -1.442695, %v1427_v11 }
 0x844   :  { %v1487_v22 = vmul.f32 -1.442695, %v1437_v20 }
 0x845   :  { %2430 = vpow2.f32 %v1486_v18 }
 0x846   :  { %2432 = vpow2.f32 %v1487_v22 }
 0x84f   :  { %v2431_v24 = vpop.eup %2430 }
 0x850   :  { %v1431_v25 = vadd.f32 1.0, %v2431_v24  ;;  %v2433_v26 = vpop.eup %2432 }
 0x851   :  { %v1441_v37 = vadd.f32 1.0, %v2433_v26 }
 0x852   :  { %2434 = vrcp.f32 %v1431_v25 }
 0x85c   :  { %v2435_v30 = vpop.eup %2434 }
 0x85d   :  { %v1445_v31 = vmul.f32 %v2435_v30, %v1444_v28 }
 0x85f   :  { %v1448_v33 = vadd.f32 %v1446_v27, %v1445_v31 }
 0x861   :  { %2436 = vtanh.f32 %v1448_v33 }
 0x862   :  { %2438 = vrcp.f32 %v1441_v37 }
 0x86b   :  { %v2437_v38 = vpop.eup %2436 }
 0x86c   :  { %v1450_v39 = vsub.f32 %v1283_v12, %v2437_v38  ;;  %v2439_v40 = vpop.eup %2438 }
 0x86e   :  { %v1451_v42 = vmul.f32 %v2439_v40, %v1450_v39 }
 0x870   :  { %v1452_v45 = vadd.f32 %v2437_v38, %v1451_v42 }
 0x872   :  { %1453 = vst [vmem:[#allocation8 + $0xe] sm:$0x3] %v1452_v45  ;;  %1454 = vst [vmem:[#allocation2] sm:$0x3] %v1452_v45 }
 0x873   :  { %2495 = shalt.err (!%p2492_p6)
}
 0x874   :  { %s2496_s15 = scalar_lea.hbm %s2969_s3, 256 }
 0x875   :  { %p2497_p7 = scmp.ne.s32.totalorder %s2969_s3, %s2496_s15  ;;  %p2500_p8 = scmp.lt.u32.totalorder %s2496_s15, %s2969_s3 }
 0x877   :  { %p2502_p9 = pnand %p2500_p8, %p2497_p7 }
 0x879   :  { %2505 = shalt.err (!%p2502_p9)
}
 0x87a   :  { %1464 = dma.vmem_to_hbm [thread:$0]  %s1462_s11, 256, %s2969_s3, [#allocation5]  }
 0x87b   :  { %2510 = dma.done.wait [#allocation5], 256  }
 0x87c   :  { %2511 = vsyncadd [#allocation5], 4294967040 }
 0x87d   :  { %1468 = vsyncpa [#allocation4], 1 }
 0x87e   :  { %1469 = vsyncpa [#allocation7], 1 }
 0x87f   :  { %1470 = vsyncpa [#allocation5], 1 }

</bundles_post_ra>
